<compile_context>
chip_gen: v5e
topology: v5e:2x2
jax: 0.10.0
libtpu: 0.0.40
codegen_flags: <defaults>
</compile_context>

<pallas_src>
import jax
import jax.numpy as jnp
from jax import lax
from jax.experimental import pallas as pl
from jax.experimental.pallas import tpu as pltpu


def lstm_kernel(x_ref, w_ih_ref, w_hhT_ref, b_ref, w_lin_ref, b_lin_ref, out_ref):
    # x_ref:     (T, B_pad, 1)   time-major input (input_size == 1)
    # w_ih_ref:  (1, 4H)         input->gates weights, lane-major
    # w_hhT_ref: (H, 4H)         hidden->gates weights, pre-transposed
    # b_ref:     (1, 4H)         b_ih + b_hh, lane-major
    # w_lin_ref: (1, H)          final linear weights
    # b_lin_ref: (1, 1)          final linear bias
    # out_ref:   (B_pad, 1)
    T = x_ref.shape[0]
    Bp = x_ref.shape[1]
    H = w_hhT_ref.shape[0]

    # Hoist weight loads out of the unrolled loop.
    w_ih = w_ih_ref[...]        # (1, 4H)
    bias = b_ref[...]           # (1, 4H)
    w_hhT = w_hhT_ref[...]      # (H, 4H)

    h0 = jnp.zeros((Bp, H), jnp.float32)
    c0 = jnp.zeros((Bp, H), jnp.float32)

    def step(t, carry):
        h, c = carry
        x_t = x_ref[t]                                  # (Bp, 1)
        # gates: (Bp, 4H) = x_t * W_ih + b + h @ W_hh^T   (PyTorch gate order i, f, g, o)
        gates = x_t * w_ih + bias + jnp.dot(h, w_hhT,
                                            preferred_element_type=jnp.float32)
        i = jax.nn.sigmoid(gates[:, 0:H])
        f = jax.nn.sigmoid(gates[:, H:2 * H])
        g = jnp.tanh(gates[:, 2 * H:3 * H])
        o = jax.nn.sigmoid(gates[:, 3 * H:4 * H])
        c_new = f * c + i * g
        h_new = o * jnp.tanh(c_new)
        return (h_new, c_new)

    # T is static and small: fully unroll so h/c stay resident in vregs and the
    # MXU push of step t can overlap the VPU/EUP tail of step t-1.
    h_last, _ = lax.fori_loop(0, T, step, (h0, c0), unroll=True)

    # TODO(synk): on v7x, W_hh^T could be held stationary in the MXU across all T steps
    # via pltpu.matmul_push_rhs / matmul_acc_lhs / matmul_pop.

    # Final linear: (B_pad, H) * (1, H) summed over lanes -> (B_pad, 1).
    out_ref[...] = (jnp.sum(h_last * w_lin_ref[...], axis=-1, keepdims=True)
                    + b_lin_ref[...])


def lstm_model_forward(x, params):
    """x: (B, T) float32 -- the PyTorch module's input before unsqueeze(-1)."""
    w_ih, w_hh, b_ih, b_hh, w_lin, b_lin = params
    B, T = x.shape
    H = w_hh.shape[1]
    G = 4 * H
    Bp = ((B + 7) // 8) * 8   # batch padded onto sublanes

    # Layout plumbing (plain JAX): time-major, batch on sublanes, gates on lanes.
    x_pad = jnp.zeros((Bp, T), jnp.float32).at[:B, :].set(x.astype(jnp.float32))
    x_k = jnp.transpose(x_pad).reshape(T, Bp, 1)       # (T, Bp, 1)
    w_ih_k = w_ih.reshape(1, G)                         # (1, 4H)
    w_hhT_k = jnp.transpose(w_hh)                       # (H, 4H)
    b_k = (b_ih + b_hh).reshape(1, G)                   # (1, 4H)
    w_lin_k = w_lin.reshape(1, H)                       # (1, H)
    b_lin_k = b_lin.reshape(1, 1)                       # (1, 1)

    out = pl.pallas_call(
        lstm_kernel,
        out_shape=jax.ShapeDtypeStruct((Bp, 1), jnp.float32),
        grid_spec=pltpu.PrefetchScalarGridSpec(
            num_scalar_prefetch=0,
            grid=(1,),   # strictly serial recurrence: no parallel grid axes
            in_specs=[
                pl.BlockSpec((T, Bp, 1), lambda i: (0, 0, 0)),
                pl.BlockSpec((1, G), lambda i: (0, 0)),
                pl.BlockSpec((H, G), lambda i: (0, 0)),
                pl.BlockSpec((1, G), lambda i: (0, 0)),
                pl.BlockSpec((1, H), lambda i: (0, 0)),
                pl.BlockSpec((1, 1), lambda i: (0, 0)),
            ],
            out_specs=pl.BlockSpec((Bp, 1), lambda i: (0, 0)),
        ),
        compiler_params=pltpu.CompilerParams(
            dimension_semantics=("arbitrary",)),
    )(x_k, w_ih_k, w_hhT_k, b_k, w_lin_k, b_lin_k)

    return out[:B, :]   # (B, 1), matches PyTorch output shape


def lstm_model_ref(x, params):
    """Pure-JAX reference reproducing the PyTorch forward exactly."""
    w_ih, w_hh, b_ih, b_hh, w_lin, b_lin = params
    B, T = x.shape
    H = w_hh.shape[1]

    def step(carry, xt):
        h, c = carry
        gates = xt[:, None] @ w_ih.T + h @ w_hh.T + b_ih + b_hh   # (B, 4H)
        i = jax.nn.sigmoid(gates[:, 0:H])
        f = jax.nn.sigmoid(gates[:, H:2 * H])
        g = jnp.tanh(gates[:, 2 * H:3 * H])
        o = jax.nn.sigmoid(gates[:, 3 * H:4 * H])
        c = f * c + i * g
        h = o * jnp.tanh(c)
        return (h, c), None

    h0 = jnp.zeros((B, H), jnp.float32)
    c0 = jnp.zeros((B, H), jnp.float32)
    (h_last, _), _ = lax.scan(step, (h0, c0), jnp.transpose(x))
    return h_last @ w_lin.T + b_lin


if __name__ == "__main__":
    B, T, H = 4, 8, 64   # batch, seq_len, hidden_size (module default hidden=64)
    key = jax.random.PRNGKey(0)
    ks = jax.random.split(key, 7)
    bound = 1.0 / jnp.sqrt(jnp.float32(H))

    # Deterministic synthetic parameters (PyTorch-style uniform(-1/sqrt(H), 1/sqrt(H)))
    w_ih = jax.random.uniform(ks[0], (4 * H, 1), jnp.float32, -bound, bound)
    w_hh = jax.random.uniform(ks[1], (4 * H, H), jnp.float32, -bound, bound)
    b_ih = jax.random.uniform(ks[2], (4 * H,), jnp.float32, -bound, bound)
    b_hh = jax.random.uniform(ks[3], (4 * H,), jnp.float32, -bound, bound)
    w_lin = jax.random.uniform(ks[4], (1, H), jnp.float32, -bound, bound)
    b_lin = jax.random.uniform(ks[5], (1,), jnp.float32, -bound, bound)
    params = (w_ih, w_hh, b_ih, b_hh, w_lin, b_lin)

    x = jax.random.normal(ks[6], (B, T), jnp.float32)   # (batch, seq_len)

    out = lstm_model_forward(x, params)
    jax.block_until_ready(out)

    ref = lstm_model_ref(x, params)
    assert out.shape == (B, 1), out.shape
    if not jnp.allclose(out, ref, atol=2e-5, rtol=2e-5):
        raise AssertionError(f"mismatch: kernel={out} ref={ref}")

    print("KERNEL_OK")
</pallas_src>

<mosaic_0001>
module attributes {stable_mosaic.version = 11 : i64} {
  func.func @lstm_kernel(%arg0: i32, %arg1: memref<8x8x1xf32, #tpu.memory_space<vmem>>, %arg2: memref<1x256xf32, #tpu.memory_space<vmem>>, %arg3: memref<64x256xf32, #tpu.memory_space<vmem>>, %arg4: memref<1x256xf32, #tpu.memory_space<vmem>>, %arg5: memref<1x64xf32, #tpu.memory_space<vmem>>, %arg6: memref<1x1xf32, #tpu.memory_space<vmem>>, %arg7: memref<8x1xf32, #tpu.memory_space<vmem>>) attributes {dimension_semantics = [#tpu.dimension_semantics<arbitrary>], iteration_bounds = array<i64: 1>, scalar_prefetch = 0 : i64, scratch_operands = 0 : i64, tpu.core_type = #tpu.core_type<tc>, window_params = [{pipeline_mode = #tpu.pipeline_mode<synchronous>, transform_indices = @transform_0, window_bounds = array<i64: 8, 8, 1>}, {pipeline_mode = #tpu.pipeline_mode<synchronous>, transform_indices = @transform_1, window_bounds = array<i64: 1, 256>}, {pipeline_mode = #tpu.pipeline_mode<synchronous>, transform_indices = @transform_2, window_bounds = array<i64: 64, 256>}, {pipeline_mode = #tpu.pipeline_mode<synchronous>, transform_indices = @transform_3, window_bounds = array<i64: 1, 256>}, {pipeline_mode = #tpu.pipeline_mode<synchronous>, transform_indices = @transform_4, window_bounds = array<i64: 1, 64>}, {pipeline_mode = #tpu.pipeline_mode<synchronous>, transform_indices = @transform_5, window_bounds = array<i64: 1, 1>}, {pipeline_mode = #tpu.pipeline_mode<synchronous>, transform_indices = @transform_6, window_bounds = array<i64: 8, 1>}]} {
    %c0 = arith.constant 0 : index
    %c0_0 = arith.constant 0 : index
    %0 = vector.load %arg2[%c0, %c0_0] : memref<1x256xf32, #tpu.memory_space<vmem>>, vector<1x256xf32>
    %c0_1 = arith.constant 0 : index
    %c0_2 = arith.constant 0 : index
    %1 = vector.load %arg4[%c0_1, %c0_2] : memref<1x256xf32, #tpu.memory_space<vmem>>, vector<1x256xf32>
    %c0_3 = arith.constant 0 : index
    %c0_4 = arith.constant 0 : index
    %2 = vector.load %arg3[%c0_3, %c0_4] : memref<64x256xf32, #tpu.memory_space<vmem>>, vector<64x256xf32>
    %cst = arith.constant 0.000000e+00 : f32
    %3 = vector.broadcast %cst : f32 to vector<8x64xf32>
    %cst_5 = arith.constant 0.000000e+00 : f32
    %4 = vector.broadcast %cst_5 : f32 to vector<8x64xf32>
    %c0_i32 = arith.constant 0 : i32
    %5 = arith.index_cast %c0_i32 : i32 to index
    %c0_6 = arith.constant 0 : index
    %c0_7 = arith.constant 0 : index
    %6 = vector.load %arg1[%5, %c0_6, %c0_7] : memref<8x8x1xf32, #tpu.memory_space<vmem>>, vector<1x8x1xf32>
    %7 = vector.shape_cast %6 : vector<1x8x1xf32> to vector<8x1xf32>
    %8 = vector.broadcast %7 : vector<8x1xf32> to vector<8x256xf32>
    %9 = vector.broadcast %0 : vector<1x256xf32> to vector<8x256xf32>
    %10 = arith.mulf %8, %9 : vector<8x256xf32>
    %11 = vector.broadcast %1 : vector<1x256xf32> to vector<8x256xf32>
    %12 = arith.addf %10, %11 : vector<8x256xf32>
    %cst_8 = arith.constant dense<0.000000e+00> : vector<8x256xf32>
    %13 = tpu.matmul %3, %2, %cst_8 {dimension_numbers = #tpu.dot_dimension_numbers<[1], [0], [0], [1], [0, 0, 1, 1], [], []>} : vector<8x64xf32>, vector<64x256xf32>, vector<8x256xf32> -> vector<8x256xf32>
    %14 = arith.addf %12, %13 : vector<8x256xf32>
    %15 = vector.extract_strided_slice %14 {offsets = [0, 0], sizes = [8, 64], strides = [1, 1]} : vector<8x256xf32> to vector<8x64xf32>
    %16 = arith.negf %15 : vector<8x64xf32>
    %17 = math.exp %16 : vector<8x64xf32>
    %cst_9 = arith.constant 1.000000e+00 : f32
    %18 = vector.broadcast %cst_9 : f32 to vector<8x64xf32>
    %19 = arith.addf %18, %17 : vector<8x64xf32>
    %20 = arith.divf %18, %19 : vector<8x64xf32>
    %21 = vector.extract_strided_slice %14 {offsets = [0, 64], sizes = [8, 64], strides = [1, 1]} : vector<8x256xf32> to vector<8x64xf32>
    %22 = arith.negf %21 : vector<8x64xf32>
    %23 = math.exp %22 : vector<8x64xf32>
    %cst_10 = arith.constant 1.000000e+00 : f32
    %24 = vector.broadcast %cst_10 : f32 to vector<8x64xf32>
    %25 = arith.addf %24, %23 : vector<8x64xf32>
    %26 = arith.divf %24, %25 : vector<8x64xf32>
    %27 = vector.extract_strided_slice %14 {offsets = [0, 128], sizes = [8, 64], strides = [1, 1]} : vector<8x256xf32> to vector<8x64xf32>
    %28 = math.tanh %27 : vector<8x64xf32>
    %29 = vector.extract_strided_slice %14 {offsets = [0, 192], sizes = [8, 64], strides = [1, 1]} : vector<8x256xf32> to vector<8x64xf32>
    %30 = arith.negf %29 : vector<8x64xf32>
    %31 = math.exp %30 : vector<8x64xf32>
    %cst_11 = arith.constant 1.000000e+00 : f32
    %32 = vector.broadcast %cst_11 : f32 to vector<8x64xf32>
    %33 = arith.addf %32, %31 : vector<8x64xf32>
    %34 = arith.divf %32, %33 : vector<8x64xf32>
    %35 = arith.mulf %26, %4 : vector<8x64xf32>
    %36 = arith.mulf %20, %28 : vector<8x64xf32>
    %37 = arith.addf %35, %36 : vector<8x64xf32>
    %38 = math.tanh %37 : vector<8x64xf32>
    %39 = arith.mulf %34, %38 : vector<8x64xf32>
    %c1_i32 = arith.constant 1 : i32
    %40 = arith.index_cast %c1_i32 : i32 to index
    %c0_12 = arith.constant 0 : index
    %c0_13 = arith.constant 0 : index
    %41 = vector.load %arg1[%40, %c0_12, %c0_13] : memref<8x8x1xf32, #tpu.memory_space<vmem>>, vector<1x8x1xf32>
    %42 = vector.shape_cast %41 : vector<1x8x1xf32> to vector<8x1xf32>
    %43 = vector.broadcast %42 : vector<8x1xf32> to vector<8x256xf32>
    %44 = vector.broadcast %0 : vector<1x256xf32> to vector<8x256xf32>
    %45 = arith.mulf %43, %44 : vector<8x256xf32>
    %46 = vector.broadcast %1 : vector<1x256xf32> to vector<8x256xf32>
    %47 = arith.addf %45, %46 : vector<8x256xf32>
    %cst_14 = arith.constant dense<0.000000e+00> : vector<8x256xf32>
    %48 = tpu.matmul %39, %2, %cst_14 {dimension_numbers = #tpu.dot_dimension_numbers<[1], [0], [0], [1], [0, 0, 1, 1], [], []>} : vector<8x64xf32>, vector<64x256xf32>, vector<8x256xf32> -> vector<8x256xf32>
    %49 = arith.addf %47, %48 : vector<8x256xf32>
    %50 = vector.extract_strided_slice %49 {offsets = [0, 0], sizes = [8, 64], strides = [1, 1]} : vector<8x256xf32> to vector<8x64xf32>
    %51 = arith.negf %50 : vector<8x64xf32>
    %52 = math.exp %51 : vector<8x64xf32>
    %cst_15 = arith.constant 1.000000e+00 : f32
    %53 = vector.broadcast %cst_15 : f32 to vector<8x64xf32>
    %54 = arith.addf %53, %52 : vector<8x64xf32>
    %55 = arith.divf %53, %54 : vector<8x64xf32>
    %56 = vector.extract_strided_slice %49 {offsets = [0, 64], sizes = [8, 64], strides = [1, 1]} : vector<8x256xf32> to vector<8x64xf32>
    %57 = arith.negf %56 : vector<8x64xf32>
    %58 = math.exp %57 : vector<8x64xf32>
    %cst_16 = arith.constant 1.000000e+00 : f32
    %59 = vector.broadcast %cst_16 : f32 to vector<8x64xf32>
    %60 = arith.addf %59, %58 : vector<8x64xf32>
    %61 = arith.divf %59, %60 : vector<8x64xf32>
    %62 = vector.extract_strided_slice %49 {offsets = [0, 128], sizes = [8, 64], strides = [1, 1]} : vector<8x256xf32> to vector<8x64xf32>
    %63 = math.tanh %62 : vector<8x64xf32>
    %64 = vector.extract_strided_slice %49 {offsets = [0, 192], sizes = [8, 64], strides = [1, 1]} : vector<8x256xf32> to vector<8x64xf32>
    %65 = arith.negf %64 : vector<8x64xf32>
    %66 = math.exp %65 : vector<8x64xf32>
    %cst_17 = arith.constant 1.000000e+00 : f32
    %67 = vector.broadcast %cst_17 : f32 to vector<8x64xf32>
    %68 = arith.addf %67, %66 : vector<8x64xf32>
    %69 = arith.divf %67, %68 : vector<8x64xf32>
    %70 = arith.mulf %61, %37 : vector<8x64xf32>
    %71 = arith.mulf %55, %63 : vector<8x64xf32>
    %72 = arith.addf %70, %71 : vector<8x64xf32>
    %73 = math.tanh %72 : vector<8x64xf32>
    %74 = arith.mulf %69, %73 : vector<8x64xf32>
    %c2_i32 = arith.constant 2 : i32
    %75 = arith.index_cast %c2_i32 : i32 to index
    %c0_18 = arith.constant 0 : index
    %c0_19 = arith.constant 0 : index
    %76 = vector.load %arg1[%75, %c0_18, %c0_19] : memref<8x8x1xf32, #tpu.memory_space<vmem>>, vector<1x8x1xf32>
    %77 = vector.shape_cast %76 : vector<1x8x1xf32> to vector<8x1xf32>
    %78 = vector.broadcast %77 : vector<8x1xf32> to vector<8x256xf32>
    %79 = vector.broadcast %0 : vector<1x256xf32> to vector<8x256xf32>
    %80 = arith.mulf %78, %79 : vector<8x256xf32>
    %81 = vector.broadcast %1 : vector<1x256xf32> to vector<8x256xf32>
    %82 = arith.addf %80, %81 : vector<8x256xf32>
    %cst_20 = arith.constant dense<0.000000e+00> : vector<8x256xf32>
    %83 = tpu.matmul %74, %2, %cst_20 {dimension_numbers = #tpu.dot_dimension_numbers<[1], [0], [0], [1], [0, 0, 1, 1], [], []>} : vector<8x64xf32>, vector<64x256xf32>, vector<8x256xf32> -> vector<8x256xf32>
    %84 = arith.addf %82, %83 : vector<8x256xf32>
    %85 = vector.extract_strided_slice %84 {offsets = [0, 0], sizes = [8, 64], strides = [1, 1]} : vector<8x256xf32> to vector<8x64xf32>
    %86 = arith.negf %85 : vector<8x64xf32>
    %87 = math.exp %86 : vector<8x64xf32>
    %cst_21 = arith.constant 1.000000e+00 : f32
    %88 = vector.broadcast %cst_21 : f32 to vector<8x64xf32>
    %89 = arith.addf %88, %87 : vector<8x64xf32>
    %90 = arith.divf %88, %89 : vector<8x64xf32>
    %91 = vector.extract_strided_slice %84 {offsets = [0, 64], sizes = [8, 64], strides = [1, 1]} : vector<8x256xf32> to vector<8x64xf32>
    %92 = arith.negf %91 : vector<8x64xf32>
    %93 = math.exp %92 : vector<8x64xf32>
    %cst_22 = arith.constant 1.000000e+00 : f32
    %94 = vector.broadcast %cst_22 : f32 to vector<8x64xf32>
    %95 = arith.addf %94, %93 : vector<8x64xf32>
    %96 = arith.divf %94, %95 : vector<8x64xf32>
    %97 = vector.extract_strided_slice %84 {offsets = [0, 128], sizes = [8, 64], strides = [1, 1]} : vector<8x256xf32> to vector<8x64xf32>
    %98 = math.tanh %97 : vector<8x64xf32>
    %99 = vector.extract_strided_slice %84 {offsets = [0, 192], sizes = [8, 64], strides = [1, 1]} : vector<8x256xf32> to vector<8x64xf32>
    %100 = arith.negf %99 : vector<8x64xf32>
    %101 = math.exp %100 : vector<8x64xf32>
    %cst_23 = arith.constant 1.000000e+00 : f32
    %102 = vector.broadcast %cst_23 : f32 to vector<8x64xf32>
    %103 = arith.addf %102, %101 : vector<8x64xf32>
    %104 = arith.divf %102, %103 : vector<8x64xf32>
    %105 = arith.mulf %96, %72 : vector<8x64xf32>
    %106 = arith.mulf %90, %98 : vector<8x64xf32>
    %107 = arith.addf %105, %106 : vector<8x64xf32>
    %108 = math.tanh %107 : vector<8x64xf32>
    %109 = arith.mulf %104, %108 : vector<8x64xf32>
    %c3_i32 = arith.constant 3 : i32
    %110 = arith.index_cast %c3_i32 : i32 to index
    %c0_24 = arith.constant 0 : index
    %c0_25 = arith.constant 0 : index
    %111 = vector.load %arg1[%110, %c0_24, %c0_25] : memref<8x8x1xf32, #tpu.memory_space<vmem>>, vector<1x8x1xf32>
    %112 = vector.shape_cast %111 : vector<1x8x1xf32> to vector<8x1xf32>
    %113 = vector.broadcast %112 : vector<8x1xf32> to vector<8x256xf32>
    %114 = vector.broadcast %0 : vector<1x256xf32> to vector<8x256xf32>
    %115 = arith.mulf %113, %114 : vector<8x256xf32>
    %116 = vector.broadcast %1 : vector<1x256xf32> to vector<8x256xf32>
    %117 = arith.addf %115, %116 : vector<8x256xf32>
    %cst_26 = arith.constant dense<0.000000e+00> : vector<8x256xf32>
    %118 = tpu.matmul %109, %2, %cst_26 {dimension_numbers = #tpu.dot_dimension_numbers<[1], [0], [0], [1], [0, 0, 1, 1], [], []>} : vector<8x64xf32>, vector<64x256xf32>, vector<8x256xf32> -> vector<8x256xf32>
    %119 = arith.addf %117, %118 : vector<8x256xf32>
    %120 = vector.extract_strided_slice %119 {offsets = [0, 0], sizes = [8, 64], strides = [1, 1]} : vector<8x256xf32> to vector<8x64xf32>
    %121 = arith.negf %120 : vector<8x64xf32>
    %122 = math.exp %121 : vector<8x64xf32>
    %cst_27 = arith.constant 1.000000e+00 : f32
    %123 = vector.broadcast %cst_27 : f32 to vector<8x64xf32>
    %124 = arith.addf %123, %122 : vector<8x64xf32>
    %125 = arith.divf %123, %124 : vector<8x64xf32>
    %126 = vector.extract_strided_slice %119 {offsets = [0, 64], sizes = [8, 64], strides = [1, 1]} : vector<8x256xf32> to vector<8x64xf32>
    %127 = arith.negf %126 : vector<8x64xf32>
    %128 = math.exp %127 : vector<8x64xf32>
    %cst_28 = arith.constant 1.000000e+00 : f32
    %129 = vector.broadcast %cst_28 : f32 to vector<8x64xf32>
    %130 = arith.addf %129, %128 : vector<8x64xf32>
    %131 = arith.divf %129, %130 : vector<8x64xf32>
    %132 = vector.extract_strided_slice %119 {offsets = [0, 128], sizes = [8, 64], strides = [1, 1]} : vector<8x256xf32> to vector<8x64xf32>
    %133 = math.tanh %132 : vector<8x64xf32>
    %134 = vector.extract_strided_slice %119 {offsets = [0, 192], sizes = [8, 64], strides = [1, 1]} : vector<8x256xf32> to vector<8x64xf32>
    %135 = arith.negf %134 : vector<8x64xf32>
    %136 = math.exp %135 : vector<8x64xf32>
    %cst_29 = arith.constant 1.000000e+00 : f32
    %137 = vector.broadcast %cst_29 : f32 to vector<8x64xf32>
    %138 = arith.addf %137, %136 : vector<8x64xf32>
    %139 = arith.divf %137, %138 : vector<8x64xf32>
    %140 = arith.mulf %131, %107 : vector<8x64xf32>
    %141 = arith.mulf %125, %133 : vector<8x64xf32>
    %142 = arith.addf %140, %141 : vector<8x64xf32>
    %143 = math.tanh %142 : vector<8x64xf32>
    %144 = arith.mulf %139, %143 : vector<8x64xf32>
    %c4_i32 = arith.constant 4 : i32
    %145 = arith.index_cast %c4_i32 : i32 to index
    %c0_30 = arith.constant 0 : index
    %c0_31 = arith.constant 0 : index
    %146 = vector.load %arg1[%145, %c0_30, %c0_31] : memref<8x8x1xf32, #tpu.memory_space<vmem>>, vector<1x8x1xf32>
    %147 = vector.shape_cast %146 : vector<1x8x1xf32> to vector<8x1xf32>
    %148 = vector.broadcast %147 : vector<8x1xf32> to vector<8x256xf32>
    %149 = vector.broadcast %0 : vector<1x256xf32> to vector<8x256xf32>
    %150 = arith.mulf %148, %149 : vector<8x256xf32>
    %151 = vector.broadcast %1 : vector<1x256xf32> to vector<8x256xf32>
    %152 = arith.addf %150, %151 : vector<8x256xf32>
    %cst_32 = arith.constant dense<0.000000e+00> : vector<8x256xf32>
    %153 = tpu.matmul %144, %2, %cst_32 {dimension_numbers = #tpu.dot_dimension_numbers<[1], [0], [0], [1], [0, 0, 1, 1], [], []>} : vector<8x64xf32>, vector<64x256xf32>, vector<8x256xf32> -> vector<8x256xf32>
    %154 = arith.addf %152, %153 : vector<8x256xf32>
    %155 = vector.extract_strided_slice %154 {offsets = [0, 0], sizes = [8, 64], strides = [1, 1]} : vector<8x256xf32> to vector<8x64xf32>
    %156 = arith.negf %155 : vector<8x64xf32>
    %157 = math.exp %156 : vector<8x64xf32>
    %cst_33 = arith.constant 1.000000e+00 : f32
    %158 = vector.broadcast %cst_33 : f32 to vector<8x64xf32>
    %159 = arith.addf %158, %157 : vector<8x64xf32>
    %160 = arith.divf %158, %159 : vector<8x64xf32>
    %161 = vector.extract_strided_slice %154 {offsets = [0, 64], sizes = [8, 64], strides = [1, 1]} : vector<8x256xf32> to vector<8x64xf32>
    %162 = arith.negf %161 : vector<8x64xf32>
    %163 = math.exp %162 : vector<8x64xf32>
    %cst_34 = arith.constant 1.000000e+00 : f32
    %164 = vector.broadcast %cst_34 : f32 to vector<8x64xf32>
    %165 = arith.addf %164, %163 : vector<8x64xf32>
    %166 = arith.divf %164, %165 : vector<8x64xf32>
    %167 = vector.extract_strided_slice %154 {offsets = [0, 128], sizes = [8, 64], strides = [1, 1]} : vector<8x256xf32> to vector<8x64xf32>
    %168 = math.tanh %167 : vector<8x64xf32>
    %169 = vector.extract_strided_slice %154 {offsets = [0, 192], sizes = [8, 64], strides = [1, 1]} : vector<8x256xf32> to vector<8x64xf32>
    %170 = arith.negf %169 : vector<8x64xf32>
    %171 = math.exp %170 : vector<8x64xf32>
    %cst_35 = arith.constant 1.000000e+00 : f32
    %172 = vector.broadcast %cst_35 : f32 to vector<8x64xf32>
    %173 = arith.addf %172, %171 : vector<8x64xf32>
    %174 = arith.divf %172, %173 : vector<8x64xf32>
    %175 = arith.mulf %166, %142 : vector<8x64xf32>
    %176 = arith.mulf %160, %168 : vector<8x64xf32>
    %177 = arith.addf %175, %176 : vector<8x64xf32>
    %178 = math.tanh %177 : vector<8x64xf32>
    %179 = arith.mulf %174, %178 : vector<8x64xf32>
    %c5_i32 = arith.constant 5 : i32
    %180 = arith.index_cast %c5_i32 : i32 to index
    %c0_36 = arith.constant 0 : index
    %c0_37 = arith.constant 0 : index
    %181 = vector.load %arg1[%180, %c0_36, %c0_37] : memref<8x8x1xf32, #tpu.memory_space<vmem>>, vector<1x8x1xf32>
    %182 = vector.shape_cast %181 : vector<1x8x1xf32> to vector<8x1xf32>
    %183 = vector.broadcast %182 : vector<8x1xf32> to vector<8x256xf32>
    %184 = vector.broadcast %0 : vector<1x256xf32> to vector<8x256xf32>
    %185 = arith.mulf %183, %184 : vector<8x256xf32>
    %186 = vector.broadcast %1 : vector<1x256xf32> to vector<8x256xf32>
    %187 = arith.addf %185, %186 : vector<8x256xf32>
    %cst_38 = arith.constant dense<0.000000e+00> : vector<8x256xf32>
    %188 = tpu.matmul %179, %2, %cst_38 {dimension_numbers = #tpu.dot_dimension_numbers<[1], [0], [0], [1], [0, 0, 1, 1], [], []>} : vector<8x64xf32>, vector<64x256xf32>, vector<8x256xf32> -> vector<8x256xf32>
    %189 = arith.addf %187, %188 : vector<8x256xf32>
    %190 = vector.extract_strided_slice %189 {offsets = [0, 0], sizes = [8, 64], strides = [1, 1]} : vector<8x256xf32> to vector<8x64xf32>
    %191 = arith.negf %190 : vector<8x64xf32>
    %192 = math.exp %191 : vector<8x64xf32>
    %cst_39 = arith.constant 1.000000e+00 : f32
    %193 = vector.broadcast %cst_39 : f32 to vector<8x64xf32>
    %194 = arith.addf %193, %192 : vector<8x64xf32>
    %195 = arith.divf %193, %194 : vector<8x64xf32>
    %196 = vector.extract_strided_slice %189 {offsets = [0, 64], sizes = [8, 64], strides = [1, 1]} : vector<8x256xf32> to vector<8x64xf32>
    %197 = arith.negf %196 : vector<8x64xf32>
    %198 = math.exp %197 : vector<8x64xf32>
    %cst_40 = arith.constant 1.000000e+00 : f32
    %199 = vector.broadcast %cst_40 : f32 to vector<8x64xf32>
    %200 = arith.addf %199, %198 : vector<8x64xf32>
    %201 = arith.divf %199, %200 : vector<8x64xf32>
    %202 = vector.extract_strided_slice %189 {offsets = [0, 128], sizes = [8, 64], strides = [1, 1]} : vector<8x256xf32> to vector<8x64xf32>
    %203 = math.tanh %202 : vector<8x64xf32>
    %204 = vector.extract_strided_slice %189 {offsets = [0, 192], sizes = [8, 64], strides = [1, 1]} : vector<8x256xf32> to vector<8x64xf32>
    %205 = arith.negf %204 : vector<8x64xf32>
    %206 = math.exp %205 : vector<8x64xf32>
    %cst_41 = arith.constant 1.000000e+00 : f32
    %207 = vector.broadcast %cst_41 : f32 to vector<8x64xf32>
    %208 = arith.addf %207, %206 : vector<8x64xf32>
    %209 = arith.divf %207, %208 : vector<8x64xf32>
    %210 = arith.mulf %201, %177 : vector<8x64xf32>
    %211 = arith.mulf %195, %203 : vector<8x64xf32>
    %212 = arith.addf %210, %211 : vector<8x64xf32>
    %213 = math.tanh %212 : vector<8x64xf32>
    %214 = arith.mulf %209, %213 : vector<8x64xf32>
    %c6_i32 = arith.constant 6 : i32
    %215 = arith.index_cast %c6_i32 : i32 to index
    %c0_42 = arith.constant 0 : index
    %c0_43 = arith.constant 0 : index
    %216 = vector.load %arg1[%215, %c0_42, %c0_43] : memref<8x8x1xf32, #tpu.memory_space<vmem>>, vector<1x8x1xf32>
    %217 = vector.shape_cast %216 : vector<1x8x1xf32> to vector<8x1xf32>
    %218 = vector.broadcast %217 : vector<8x1xf32> to vector<8x256xf32>
    %219 = vector.broadcast %0 : vector<1x256xf32> to vector<8x256xf32>
    %220 = arith.mulf %218, %219 : vector<8x256xf32>
    %221 = vector.broadcast %1 : vector<1x256xf32> to vector<8x256xf32>
    %222 = arith.addf %220, %221 : vector<8x256xf32>
    %cst_44 = arith.constant dense<0.000000e+00> : vector<8x256xf32>
    %223 = tpu.matmul %214, %2, %cst_44 {dimension_numbers = #tpu.dot_dimension_numbers<[1], [0], [0], [1], [0, 0, 1, 1], [], []>} : vector<8x64xf32>, vector<64x256xf32>, vector<8x256xf32> -> vector<8x256xf32>
    %224 = arith.addf %222, %223 : vector<8x256xf32>
    %225 = vector.extract_strided_slice %224 {offsets = [0, 0], sizes = [8, 64], strides = [1, 1]} : vector<8x256xf32> to vector<8x64xf32>
    %226 = arith.negf %225 : vector<8x64xf32>
    %227 = math.exp %226 : vector<8x64xf32>
    %cst_45 = arith.constant 1.000000e+00 : f32
    %228 = vector.broadcast %cst_45 : f32 to vector<8x64xf32>
    %229 = arith.addf %228, %227 : vector<8x64xf32>
    %230 = arith.divf %228, %229 : vector<8x64xf32>
    %231 = vector.extract_strided_slice %224 {offsets = [0, 64], sizes = [8, 64], strides = [1, 1]} : vector<8x256xf32> to vector<8x64xf32>
    %232 = arith.negf %231 : vector<8x64xf32>
    %233 = math.exp %232 : vector<8x64xf32>
    %cst_46 = arith.constant 1.000000e+00 : f32
    %234 = vector.broadcast %cst_46 : f32 to vector<8x64xf32>
    %235 = arith.addf %234, %233 : vector<8x64xf32>
    %236 = arith.divf %234, %235 : vector<8x64xf32>
    %237 = vector.extract_strided_slice %224 {offsets = [0, 128], sizes = [8, 64], strides = [1, 1]} : vector<8x256xf32> to vector<8x64xf32>
    %238 = math.tanh %237 : vector<8x64xf32>
    %239 = vector.extract_strided_slice %224 {offsets = [0, 192], sizes = [8, 64], strides = [1, 1]} : vector<8x256xf32> to vector<8x64xf32>
    %240 = arith.negf %239 : vector<8x64xf32>
    %241 = math.exp %240 : vector<8x64xf32>
    %cst_47 = arith.constant 1.000000e+00 : f32
    %242 = vector.broadcast %cst_47 : f32 to vector<8x64xf32>
    %243 = arith.addf %242, %241 : vector<8x64xf32>
    %244 = arith.divf %242, %243 : vector<8x64xf32>
    %245 = arith.mulf %236, %212 : vector<8x64xf32>
    %246 = arith.mulf %230, %238 : vector<8x64xf32>
    %247 = arith.addf %245, %246 : vector<8x64xf32>
    %248 = math.tanh %247 : vector<8x64xf32>
    %249 = arith.mulf %244, %248 : vector<8x64xf32>
    %c7_i32 = arith.constant 7 : i32
    %250 = arith.index_cast %c7_i32 : i32 to index
    %c0_48 = arith.constant 0 : index
    %c0_49 = arith.constant 0 : index
    %251 = vector.load %arg1[%250, %c0_48, %c0_49] : memref<8x8x1xf32, #tpu.memory_space<vmem>>, vector<1x8x1xf32>
    %252 = vector.shape_cast %251 : vector<1x8x1xf32> to vector<8x1xf32>
    %253 = vector.broadcast %252 : vector<8x1xf32> to vector<8x256xf32>
    %254 = vector.broadcast %0 : vector<1x256xf32> to vector<8x256xf32>
    %255 = arith.mulf %253, %254 : vector<8x256xf32>
    %256 = vector.broadcast %1 : vector<1x256xf32> to vector<8x256xf32>
    %257 = arith.addf %255, %256 : vector<8x256xf32>
    %cst_50 = arith.constant dense<0.000000e+00> : vector<8x256xf32>
    %258 = tpu.matmul %249, %2, %cst_50 {dimension_numbers = #tpu.dot_dimension_numbers<[1], [0], [0], [1], [0, 0, 1, 1], [], []>} : vector<8x64xf32>, vector<64x256xf32>, vector<8x256xf32> -> vector<8x256xf32>
    %259 = arith.addf %257, %258 : vector<8x256xf32>
    %260 = vector.extract_strided_slice %259 {offsets = [0, 0], sizes = [8, 64], strides = [1, 1]} : vector<8x256xf32> to vector<8x64xf32>
    %261 = arith.negf %260 : vector<8x64xf32>
    %262 = math.exp %261 : vector<8x64xf32>
    %cst_51 = arith.constant 1.000000e+00 : f32
    %263 = vector.broadcast %cst_51 : f32 to vector<8x64xf32>
    %264 = arith.addf %263, %262 : vector<8x64xf32>
    %265 = arith.divf %263, %264 : vector<8x64xf32>
    %266 = vector.extract_strided_slice %259 {offsets = [0, 64], sizes = [8, 64], strides = [1, 1]} : vector<8x256xf32> to vector<8x64xf32>
    %267 = arith.negf %266 : vector<8x64xf32>
    %268 = math.exp %267 : vector<8x64xf32>
    %cst_52 = arith.constant 1.000000e+00 : f32
    %269 = vector.broadcast %cst_52 : f32 to vector<8x64xf32>
    %270 = arith.addf %269, %268 : vector<8x64xf32>
    %271 = arith.divf %269, %270 : vector<8x64xf32>
    %272 = vector.extract_strided_slice %259 {offsets = [0, 128], sizes = [8, 64], strides = [1, 1]} : vector<8x256xf32> to vector<8x64xf32>
    %273 = math.tanh %272 : vector<8x64xf32>
    %274 = vector.extract_strided_slice %259 {offsets = [0, 192], sizes = [8, 64], strides = [1, 1]} : vector<8x256xf32> to vector<8x64xf32>
    %275 = arith.negf %274 : vector<8x64xf32>
    %276 = math.exp %275 : vector<8x64xf32>
    %cst_53 = arith.constant 1.000000e+00 : f32
    %277 = vector.broadcast %cst_53 : f32 to vector<8x64xf32>
    %278 = arith.addf %277, %276 : vector<8x64xf32>
    %279 = arith.divf %277, %278 : vector<8x64xf32>
    %280 = arith.mulf %271, %247 : vector<8x64xf32>
    %281 = arith.mulf %265, %273 : vector<8x64xf32>
    %282 = arith.addf %280, %281 : vector<8x64xf32>
    %283 = math.tanh %282 : vector<8x64xf32>
    %284 = arith.mulf %279, %283 : vector<8x64xf32>
    %c8_i32 = arith.constant 8 : i32
    %c0_54 = arith.constant 0 : index
    %c0_55 = arith.constant 0 : index
    %285 = vector.load %arg5[%c0_54, %c0_55] : memref<1x64xf32, #tpu.memory_space<vmem>>, vector<1x64xf32>
    %286 = vector.broadcast %285 : vector<1x64xf32> to vector<8x64xf32>
    %287 = arith.mulf %284, %286 : vector<8x64xf32>
    %cst_56 = arith.constant dense<0.000000e+00> : vector<8xf32>
    %288 = vector.multi_reduction <add>, %287, %cst_56 [1] : vector<8x64xf32> to vector<8xf32>
    %289 = vector.shape_cast %288 : vector<8xf32> to vector<8x1xf32>
    %c0_57 = arith.constant 0 : index
    %c0_58 = arith.constant 0 : index
    %290 = vector.load %arg6[%c0_57, %c0_58] : memref<1x1xf32, #tpu.memory_space<vmem>>, vector<1x1xf32>
    %291 = vector.broadcast %290 : vector<1x1xf32> to vector<8x1xf32>
    %292 = arith.addf %289, %291 : vector<8x1xf32>
    %c0_59 = arith.constant 0 : index
    %c0_60 = arith.constant 0 : index
    %293 = vector.load %arg7[%c0_59, %c0_60] : memref<8x1xf32, #tpu.memory_space<vmem>>, vector<8x1xf32>
    tpu.vector_store %arg7[%c0_59, %c0_60], %292 {strides = array<i32>} : memref<8x1xf32, #tpu.memory_space<vmem>>, vector<8x1xf32>,
    return
  }
  func.func @transform_0(%arg0: i32) -> (i32, i32, i32) {
    %c0_i32 = arith.constant 0 : i32
    %c0_i32_0 = arith.constant 0 : i32
    %c0_i32_1 = arith.constant 0 : i32
    %c0_i32_2 = arith.constant 0 : i32
    return %c0_i32, %c0_i32_0, %c0_i32_1 : i32, i32, i32
  }
  func.func @transform_1(%arg0: i32) -> (i32, i32) {
    %c0_i32 = arith.constant 0 : i32
    %c0_i32_0 = arith.constant 0 : i32
    %c0_i32_1 = arith.constant 0 : i32
    return %c0_i32, %c0_i32_0 : i32, i32
  }
  func.func @transform_2(%arg0: i32) -> (i32, i32) {
    %c0_i32 = arith.constant 0 : i32
    %c0_i32_0 = arith.constant 0 : i32
    %c0_i32_1 = arith.constant 0 : i32
    return %c0_i32, %c0_i32_0 : i32, i32
  }
  func.func @transform_3(%arg0: i32) -> (i32, i32) {
    %c0_i32 = arith.constant 0 : i32
    %c0_i32_0 = arith.constant 0 : i32
    %c0_i32_1 = arith.constant 0 : i32
    return %c0_i32, %c0_i32_0 : i32, i32
  }
  func.func @transform_4(%arg0: i32) -> (i32, i32) {
    %c0_i32 = arith.constant 0 : i32
    %c0_i32_0 = arith.constant 0 : i32
    %c0_i32_1 = arith.constant 0 : i32
    return %c0_i32, %c0_i32_0 : i32, i32
  }
  func.func @transform_5(%arg0: i32) -> (i32, i32) {
    %c0_i32 = arith.constant 0 : i32
    %c0_i32_0 = arith.constant 0 : i32
    %c0_i32_1 = arith.constant 0 : i32
    return %c0_i32, %c0_i32_0 : i32, i32
  }
  func.func @transform_6(%arg0: i32) -> (i32, i32) {
    %c0_i32 = arith.constant 0 : i32
    %c0_i32_0 = arith.constant 0 : i32
    %c0_i32_1 = arith.constant 0 : i32
    return %c0_i32, %c0_i32_0 : i32, i32
  }
}

</mosaic_0001>

<bundles_post_ra>
// kernel: tpu_custom_call.1
= control target key start
LH: loop header
LB: loop body
LE: loop exit
PB: predicated region body
PF: predicated region fallthrough
CT: control target
= control target key end

     0   :  { %s1437_s0 = inlined_call_operand.vmem [shape: f32[8,8,1], index: 0, kind: input, shape index: {}]   ;;  %s1438_s1 = inlined_call_operand.vmem [shape: f32[1,256], index: 1, kind: input, shape index: {}]   ;;  %s1439_s2 = inlined_call_operand.hbm [shape: f32[64,256], index: 2, kind: input, shape index: {}]   ;;  %s1440_s3 = inlined_call_operand.vmem [shape: f32[1,256], index: 3, kind: input, shape index: {}]   ;;  %s1441_s4 = inlined_call_operand.vmem [shape: f32[1,64], index: 4, kind: input, shape index: {}]   ;;  %s1442_s5 = inlined_call_operand.<no memory space> [shape: f32[1,1], index: 5, kind: input, shape index: {}]   ;;  %s1443_s6 = inlined_call_operand.vmem [shape: f32[8,1], index: 6, kind: output, shape index: {}]  }
   0x1   :  { %v11_v0 = vstv %s1442_s5 }
   0x2   :  { %12 = vst [vmem:[#allocation2] sm:$0x1] %v11_v0 }
   0x3   :  { %13 = vsyncpa [#allocation4], 0  ;;  %s22_s25 = sshll.u32 %s1439_s2, 4  ;;  %s1110_s26 = smov [#allocation3]   ;;  %s23_s25 = int_to_ptr.hbm [resolvable:$true] %s22_s25 }
   0x4   :  { %s24_s27 = sshll.u32 %s1110_s26, 4  ;;  %s1111_s28 = smov 256   ;;  %s25_s27 = int_to_ptr.vmem [resolvable:$true] %s24_s27 }
   0x5   :  { %s1112_s29 = smov 16  }
   0x6   :  { %30 = dma.hbm_to_vmem [thread:$0]  %s23_s25, 2048, %s25_s27, [#allocation4], %s1111_s28, %s1111_s28, %s1112_s29  }
   0x7   :  { %1108 = dma.done.wait [#allocation4], 2048  }
   0x8   :  { %1109 = vsyncadd [#allocation4], 4294965248  ;;  %v1113_v1 = vmov 0   ;;  %v1157_v2 = vld [vmem:[#allocation3 + $0x70] sm:$0xff]  ;;  %v1159_v3 = vld [vmem:[#allocation3 + $0x78] sm:$0xff]  ;;  %v1114_v19 = vmov 0.0  }
   0x9   :  { %984 = vset.pattern.permute.xlu0 %v1113_v1  ;;  %985 = vset.pattern.permute.xlu1 %v1113_v1  ;;  %v1161_v4 = vld [vmem:[#allocation3 + $0x60] sm:$0xff]  ;;  %v1165_v5 = vld [vmem:[#allocation3 + $0x68] sm:$0xff]  ;;  %v1167_v6 = vld [vmem:[#allocation3 + $0x50] sm:$0xff]  ;;  %vm79_vm8 = vcmask 523264  }
   0xa   :  { %91 = vmatpush.msra.mxu0 %v1157_v2  ;;  %111 = vmatpush.msra.mxu1 %v1159_v3  ;;  %v1169_v7 = vld [vmem:[#allocation3 + $0x58] sm:$0xff]  ;;  %v1175_v8 = vld [vmem:[#allocation3 + $0x40] sm:$0xff]  ;;  %v1177_v9 = vld [vmem:[#allocation3 + $0x48] sm:$0xff] }
   0xb   :  { %197 = vmatpush.msra.mxu2 %v1157_v2  ;;  %217 = vmatpush.msra.mxu3 %v1159_v3  ;;  %v59_v10 = vld [vmem:[%s1437_s0] sm:$0xff]  ;;  %v1186_v11 = vld [vmem:[#allocation3 + $0x30] sm:$0xff]  ;;  %v1195_v14 = vld [vmem:[#allocation3 + $0x28] sm:$0xff] }
   0xc   :  { %92 = vmatpush.msra.mxu0 %v1161_v4  ;;  %112 = vmatpush.msra.mxu1 %v1165_v5  ;;  %v1188_v12 = vld [vmem:[#allocation3 + $0x38] sm:$0xff]  ;;  %v1193_v13 = vld [vmem:[#allocation3 + $0x20] sm:$0xff]  ;;  %v1201_v15 = vld [vmem:[#allocation3 + $0x10] sm:$0xff] }
   0xd   :  { %198 = vmatpush.msra.mxu2 %v1161_v4  ;;  %218 = vmatpush.msra.mxu3 %v1165_v5  ;;  %v1203_v16 = vld [vmem:[#allocation3 + $0x18] sm:$0xff]  ;;  %v1209_v17 = vld [vmem:[#allocation3] sm:$0xff]  ;;  %v1211_v18 = vld [vmem:[#allocation3 + $0x8] sm:$0xff] }
   0xe   :  { %93 = vmatpush.msra.mxu0 %v1167_v6  ;;  %113 = vmatpush.msra.mxu1 %v1169_v7  ;;  %v41_v20 = vld [vmem:[%s1438_s1] sm:$0x3]  ;;  %s1115_s1 = smov 64   ;;  %v948_v50 = vld [vmem:[%s1437_s0 + $0x10] sm:$0xff]  ;;  %v953_v51 = vld [vmem:[%s1437_s0 + $0x18] sm:$0xff] }
   0xf   :  { %62 = vperm.xlu0 %984, %v59_v10   ;;  %199 = vmatpush.msra.mxu2 %v1167_v6  ;;  %v1275_v21 = vperm.slane %v41_v20, 0  ;;  %v42_v23 = vld [vmem:[%s1440_s3] sm:$0x3]  ;;  %v1284_v30 = vperm.slane %v41_v20, 1  ;;  %v963_v53 = vld [vmem:[%s1437_s0 + $0x28] sm:$0xff]  ;;  %v968_v54 = vld [vmem:[%s1437_s0 + $0x30] sm:$0xff] }
  0x10   :  { %94 = vmatpush.msra.mxu0 %v1175_v8  ;;  %114 = vmatpush.msra.mxu1 %v1177_v9  ;;  %v1281_v25 = vperm.slane %v42_v23, 0  ;;  %v1287_v34 = vperm.slane %v42_v23, 1  ;;  %v958_v52 = vld [vmem:[%s1437_s0 + $0x20] sm:$0xff]  ;;  %v973_v55 = vld [vmem:[%s1437_s0 + $0x38] sm:$0xff] }
  0x11   :  { %219 = vmatpush.msra.mxu3 %v1169_v7  ;;  %200 = vmatpush.msra.mxu2 %v1175_v8 }
  0x12   :  { %95 = vmatpush.msra.mxu0 %v1186_v11  ;;  %115 = vmatpush.msra.mxu1 %v1188_v12 }
  0x13   :  { %220 = vmatpush.msra.mxu3 %v1177_v9  ;;  %201 = vmatpush.msra.mxu2 %v1186_v11 }
  0x14   :  { %96 = vmatpush.msra.mxu0 %v1193_v13  ;;  %116 = vmatpush.msra.mxu1 %v1195_v14 }
  0x15   :  { %221 = vmatpush.msra.mxu3 %v1188_v12  ;;  %202 = vmatpush.msra.mxu2 %v1193_v13 }
  0x16   :  { %97 = vmatpush.msra.mxu0 %v1201_v15  ;;  %117 = vmatpush.msra.mxu1 %v1203_v16 }
  0x17   :  { %222 = vmatpush.msra.mxu3 %v1195_v14  ;;  %203 = vmatpush.msra.mxu2 %v1201_v15 }
  0x18   :  { %98 = vmatpush.msra.mxu0 %v1209_v17  ;;  %118 = vmatpush.msra.mxu1 %v1211_v18 }
  0x19   :  { %99 = vmatmul.f32.vlgmr.msra.gmra.mxu0 %v1114_v19  ;;  %119 = vmatmul.f32.vlgmr.msra.gmra.mxu1 %v1114_v19 }
  0x1a   :  { %223 = vmatpush.msra.mxu3 %v1203_v16  ;;  %204 = vmatpush.msra.mxu2 %v1209_v17 }
  0x1b   :  { %303 = vmatpush.msrb.mxu0 %v1157_v2  ;;  %323 = vmatpush.msrb.mxu1 %v1159_v3 }
  0x1c   :  { %224 = vmatpush.msra.mxu3 %v1211_v18  ;;  %409 = vmatpush.msrb.mxu2 %v1157_v2 }
  0x1d   :  { %304 = vmatpush.msrb.mxu0 %v1161_v4  ;;  %324 = vmatpush.msrb.mxu1 %v1165_v5 }
  0x1e   :  { %429 = vmatpush.msrb.mxu3 %v1159_v3  ;;  %410 = vmatpush.msrb.mxu2 %v1161_v4 }
  0x1f   :  { %305 = vmatpush.msrb.mxu0 %v1167_v6  ;;  %325 = vmatpush.msrb.mxu1 %v1169_v7 }
  0x20   :  { %430 = vmatpush.msrb.mxu3 %v1165_v5  ;;  %411 = vmatpush.msrb.mxu2 %v1167_v6 }
  0x21   :  { %306 = vmatpush.msrb.mxu0 %v1175_v8  ;;  %326 = vmatpush.msrb.mxu1 %v1177_v9 }
  0x22   :  { %431 = vmatpush.msrb.mxu3 %v1169_v7  ;;  %412 = vmatpush.msrb.mxu2 %v1175_v8 }
  0x23   :  { %307 = vmatpush.msrb.mxu0 %v1186_v11  ;;  %327 = vmatpush.msrb.mxu1 %v1188_v12 }
  0x24   :  { %432 = vmatpush.msrb.mxu3 %v1177_v9  ;;  %413 = vmatpush.msrb.mxu2 %v1186_v11 }
  0x25   :  { %308 = vmatpush.msrb.mxu0 %v1193_v13  ;;  %328 = vmatpush.msrb.mxu1 %v1195_v14 }
  0x26   :  { %433 = vmatpush.msrb.mxu3 %v1188_v12  ;;  %414 = vmatpush.msrb.mxu2 %v1193_v13 }
  0x27   :  { %309 = vmatpush.msrb.mxu0 %v1201_v15  ;;  %329 = vmatpush.msrb.mxu1 %v1203_v16 }
  0x28   :  { %434 = vmatpush.msrb.mxu3 %v1195_v14  ;;  %415 = vmatpush.msrb.mxu2 %v1201_v15 }
  0x29   :  { %310 = vmatpush.msrb.mxu0 %v1209_v17  ;;  %330 = vmatpush.msrb.mxu1 %v1211_v18 }
  0x2a   :  { %435 = vmatpush.msrb.mxu3 %v1203_v16  ;;  %416 = vmatpush.msrb.mxu2 %v1209_v17 }
  0x2b   :  { %515 = vmatpush.msra.mxu0 %v1157_v2  ;;  %535 = vmatpush.msra.mxu1 %v1159_v3 }
  0x2c   :  { %436 = vmatpush.msrb.mxu3 %v1211_v18 }
  0x2d   :  { %516 = vmatpush.msra.mxu0 %v1161_v4  ;;  %536 = vmatpush.msra.mxu1 %v1165_v5 }
  0x2f   :  { %517 = vmatpush.msra.mxu0 %v1167_v6  ;;  %537 = vmatpush.msra.mxu1 %v1169_v7 }
  0x31   :  { %518 = vmatpush.msra.mxu0 %v1175_v8  ;;  %538 = vmatpush.msra.mxu1 %v1177_v9 }
  0x33   :  { %519 = vmatpush.msra.mxu0 %v1186_v11  ;;  %539 = vmatpush.msra.mxu1 %v1188_v12 }
  0x35   :  { %520 = vmatpush.msra.mxu0 %v1193_v13  ;;  %540 = vmatpush.msra.mxu1 %v1195_v14 }
  0x37   :  { %521 = vmatpush.msra.mxu0 %v1201_v15  ;;  %541 = vmatpush.msra.mxu1 %v1203_v16 }
  0x39   :  { %522 = vmatpush.msra.mxu0 %v1209_v17  ;;  %542 = vmatpush.msra.mxu1 %v1211_v18 }
  0x81   :  { %v63_v22 = vpop.permute.xlu0 %62 }
  0x82   :  { %v70_v24 = vmul.f32 %v1275_v21, %v63_v22  ;;  %v71_v32 = vmul.f32 %v1284_v30, %v63_v22 }
  0x84   :  { %v77_v26 = vadd.f32 %v1281_v25, %v70_v24  ;;  %v78_v35 = vadd.f32 %v1287_v34, %v71_v32 }
  0x96   :  { %v100_v27 = vpop.f32.mrf.mxu0  ;;  %v120_v36 = vpop.f32.mrf.mxu1 }
  0x97   :  { %v123_v28 = vadd.f32 %v100_v27, %v77_v26  ;;  %v124_v38 = vadd.f32 %v120_v36, %v78_v35 }
  0x99   :  { %v941_v29 = vmul.f32 -1.442695, %v123_v28  ;;  %v942_v56 = vmul.f32 -1.442695, %v124_v38  ;;  %v943_v28 = vld [vmem:[%s1437_s0 + $0x8] sm:$0xff] }
  0x9b   :  { %988 = vpow2.f32 %v941_v29 }
  0xa1   :  { %v989_v31 = vpop.eup %988 }
  0xa2   :  { %v128_v33 = vadd.f32 1.0, %v989_v31 }
  0xa4   :  { %990 = vrcp.f32 %v128_v33  ;;  %v140_v41 = vand.u32 2147483648, %v128_v33  ;;  %v138_v43 = vand.u32 2147483647, %v128_v33  ;;  %vm134_vm1 = vweird.f32 %v128_v33 }
  0xa5   :  { %992 = vtanh.f32 %v124_v38 }
  0xa6   :  { %v141_v45 = vor.u32 1.1754944e-38, %v140_v41  ;;  %vm139_vm3 = vcmp.eq.f32.partialorder %v138_v43, 8.507059e+37  ;;  %994 = vpow2.f32 %v942_v56 }
  0xaa   :  { %v991_v37 = vpop.eup %990 }
  0xab   :  { %v130_v39 = vmul.f32 %v991_v37, %v128_v33  ;;  %vm135_vm0 = vweird.f32 %v991_v37  ;;  %v993_v47 = vpop.eup %992 }
  0xac   :  { %vm136_vm2 = vmor %vm134_vm1, %vm135_vm0  ;;  %v995_v57 = vpop.eup %994 }
  0xad   :  { %v131_v40 = vsub.f32 1.0, %v130_v39  ;;  %v148_v58 = vadd.f32 1.0, %v995_v57 }
  0xaf   :  { %v132_v42 = vmul.f32 %v991_v37, %v131_v40  ;;  %996 = vrcp.f32 %v148_v58  ;;  %v160_v19 = vand.u32 2147483648, %v148_v58  ;;  %vm154_vm5 = vweird.f32 %v148_v58 }
  0xb0   :  { %v158_v20 = vand.u32 2147483647, %v148_v58 }
  0xb1   :  { %v133_v44 = vadd.f32 %v991_v37, %v132_v42  ;;  %v161_v23 = vor.u32 1.1754944e-38, %v160_v19 }
  0xb2   :  { %vm159_vm7 = vcmp.eq.f32.partialorder %v158_v20, 8.507059e+37 }
  0xb3   :  { %v137_v46 = vsel %vm136_vm2, %v991_v37, %v133_v44 }
  0xb4   :  { %v142_v48 = vsel %vm139_vm3, %v141_v45, %v137_v46 }
  0xb5   :  { %v165_v49 = vmul.f32 %v993_v47, %v142_v48  ;;  %v997_v59 = vpop.eup %996  ;;  %v164_v63 = vmul.f32 0.0, %v142_v48 }
  0xb6   :  { %v150_v60 = vmul.f32 %v997_v59, %v148_v58  ;;  %vm155_vm4 = vweird.f32 %v997_v59 }
  0xb7   :  { %167 = vrot.lane.b32.xlu0 %v165_v49, %s1115_s1  ;;  %vm156_vm6 = vmor %vm154_vm5, %vm155_vm4 }
  0xb8   :  { %v151_v61 = vsub.f32 1.0, %v150_v60 }
  0xba   :  { %v152_v62 = vmul.f32 %v997_v59, %v151_v61 }
  0xbc   :  { %v153_v10 = vadd.f32 %v997_v59, %v152_v62 }
  0xbe   :  { %v157_v22 = vsel %vm156_vm6, %v997_v59, %v153_v10 }
  0xbf   :  { %283 = vperm.xlu0 %984, %v948_v50   ;;  %v162_v26 = vsel %vm159_vm7, %v161_v23, %v157_v22 }
  0xc7   :  { %389 = vperm.xlu0 %984, %v953_v51  }
  0xcf   :  { %495 = vperm.xlu0 %984, %v958_v52  }
  0xd7   :  { %601 = vperm.xlu0 %984, %v963_v53  }
  0xdf   :  { %707 = vperm.xlu0 %984, %v968_v54  }
  0xe7   :  { %813 = vperm.xlu0 %984, %v973_v55  }
 0x129   :  { %v168_v0 = vpop.permute.xlu0 %167 }
 0x12a   :  { %v1309_v1 = vadd.f32 %v168_v0, %v164_v63 }
 0x12c   :  { %998 = vtanh.f32 %v1309_v1 }
 0x132   :  { %v999_v24 = vpop.eup %998 }
 0x133   :  { %v172_v27 = vmul.f32 %v999_v24, %v162_v26 }
 0x135   :  { %185 = vrot.lane.b32.xlu1 %v172_v27, %s1115_s1 }
 0x13d   :  { %177 = vperm.xlu1 %985, %v943_v28  }
 0x1a7   :  { %v186_v29 = vpop.permute.xlu1 %185 }
 0x1a8   :  { %944 = vmatmul.msk.f32.vlgmr.msra.gmra.mxu2 %vm79_vm8, %v186_v29  ;;  %945 = vmatmul.msk.f32.vlgmr.msra.gmra.mxu3 %vm79_vm8, %v186_v29  ;;  %v284_v29 = vpop.permute.xlu0 %283 }
 0x1a9   :  { %621 = vmatpush.msra.mxu2 %v1157_v2  ;;  %641 = vmatpush.msra.mxu3 %v1159_v3 }
 0x1ab   :  { %622 = vmatpush.msra.mxu2 %v1161_v4  ;;  %642 = vmatpush.msra.mxu3 %v1165_v5 }
 0x1ad   :  { %623 = vmatpush.msra.mxu2 %v1167_v6  ;;  %643 = vmatpush.msra.mxu3 %v1169_v7 }
 0x1af   :  { %624 = vmatpush.msra.mxu2 %v1175_v8  ;;  %644 = vmatpush.msra.mxu3 %v1177_v9  ;;  %v178_v31 = vpop.permute.xlu1 %177 }
 0x1b0   :  { %v180_v32 = vmul.f32 %v178_v31, %v1275_v21  ;;  %v181_v39 = vmul.f32 %v178_v31, %v1284_v30  ;;  %v286_v31 = vmul.f32 %v284_v29, %v1275_v21 }
 0x1b1   :  { %625 = vmatpush.msra.mxu2 %v1186_v11  ;;  %645 = vmatpush.msra.mxu3 %v1188_v12 }
 0x1b2   :  { %v182_v33 = vadd.f32 %v180_v32, %v1281_v25  ;;  %v183_v41 = vadd.f32 %v181_v39, %v1287_v34  ;;  %v288_v32 = vadd.f32 %v286_v31, %v1281_v25  ;;  %v287_v39 = vmul.f32 %v284_v29, %v1284_v30 }
 0x1b3   :  { %626 = vmatpush.msra.mxu2 %v1193_v13  ;;  %646 = vmatpush.msra.mxu3 %v1195_v14 }
 0x1b5   :  { %627 = vmatpush.msra.mxu2 %v1201_v15  ;;  %647 = vmatpush.msra.mxu3 %v1203_v16 }
 0x1b7   :  { %628 = vmatpush.msra.mxu2 %v1209_v17  ;;  %648 = vmatpush.msra.mxu3 %v1211_v18 }
 0x22b   :  { %v206_v35 = vpop.f32.mrf.mxu2  ;;  %v226_v42 = vpop.f32.mrf.mxu3 }
 0x22c   :  { %v229_v36 = vadd.f32 %v206_v35, %v182_v33  ;;  %v230_v44 = vadd.f32 %v226_v42, %v183_v41  ;;  %v289_v41 = vadd.f32 %v287_v39, %v1287_v34 }
 0x22e   :  { %v946_v37 = vmul.f32 -1.442695, %v229_v36  ;;  %v947_v56 = vmul.f32 -1.442695, %v230_v44 }
 0x230   :  { %1000 = vpow2.f32 %v946_v37 }
 0x236   :  { %v1001_v38 = vpop.eup %1000 }
 0x237   :  { %v234_v40 = vadd.f32 1.0, %v1001_v38 }
 0x239   :  { %1002 = vrcp.f32 %v234_v40  ;;  %v246_v47 = vand.u32 2147483648, %v234_v40  ;;  %v244_v49 = vand.u32 2147483647, %v234_v40  ;;  %vm240_vm10 = vweird.f32 %v234_v40 }
 0x23a   :  { %1004 = vtanh.f32 %v230_v44 }
 0x23b   :  { %v247_v51 = vor.u32 1.1754944e-38, %v246_v47  ;;  %vm245_vm12 = vcmp.eq.f32.partialorder %v244_v49, 8.507059e+37  ;;  %1006 = vpow2.f32 %v947_v56 }
 0x23f   :  { %v1003_v43 = vpop.eup %1002 }
 0x240   :  { %v236_v45 = vmul.f32 %v1003_v43, %v234_v40  ;;  %vm241_vm9 = vweird.f32 %v1003_v43  ;;  %v1005_v53 = vpop.eup %1004 }
 0x241   :  { %vm242_vm11 = vmor %vm240_vm10, %vm241_vm9  ;;  %v1007_v57 = vpop.eup %1006 }
 0x242   :  { %v237_v46 = vsub.f32 1.0, %v236_v45  ;;  %v254_v58 = vadd.f32 1.0, %v1007_v57 }
 0x244   :  { %v238_v48 = vmul.f32 %v1003_v43, %v237_v46  ;;  %1008 = vrcp.f32 %v254_v58  ;;  %v266_v20 = vand.u32 2147483648, %v254_v58  ;;  %vm260_vm14 = vweird.f32 %v254_v58 }
 0x245   :  { %v264_v22 = vand.u32 2147483647, %v254_v58 }
 0x246   :  { %v239_v50 = vadd.f32 %v1003_v43, %v238_v48  ;;  %v267_v24 = vor.u32 1.1754944e-38, %v266_v20 }
 0x247   :  { %vm265_vm0 = vcmp.eq.f32.partialorder %v264_v22, 8.507059e+37 }
 0x248   :  { %v243_v52 = vsel %vm242_vm11, %v1003_v43, %v239_v50 }
 0x249   :  { %v248_v54 = vsel %vm245_vm12, %v247_v51, %v243_v52 }
 0x24a   :  { %v271_v55 = vmul.f32 %v1005_v53, %v248_v54  ;;  %v1009_v59 = vpop.eup %1008  ;;  %v270_v63 = vmul.f32 %v248_v54, %v1309_v1 }
 0x24b   :  { %v256_v60 = vmul.f32 %v1009_v59, %v254_v58  ;;  %vm261_vm13 = vweird.f32 %v1009_v59 }
 0x24c   :  { %273 = vrot.lane.b32.xlu2 %v271_v55, %s1115_s1  ;;  %vm262_vm15 = vmor %vm260_vm14, %vm261_vm13 }
 0x24d   :  { %v257_v61 = vsub.f32 1.0, %v256_v60 }
 0x24f   :  { %v258_v62 = vmul.f32 %v1009_v59, %v257_v61 }
 0x251   :  { %v259_v19 = vadd.f32 %v1009_v59, %v258_v62 }
 0x253   :  { %v263_v23 = vsel %vm262_vm15, %v1009_v59, %v259_v19 }
 0x254   :  { %v268_v27 = vsel %vm265_vm0, %v267_v24, %v263_v23 }
 0x2a6   :  { %v274_v0 = vpop.permute.xlu2 %273 }
 0x2a7   :  { %v1340_v10 = vadd.f32 %v274_v0, %v270_v63 }
 0x2a9   :  { %1010 = vtanh.f32 %v1340_v10 }
 0x2af   :  { %v1011_v26 = vpop.eup %1010 }
 0x2b0   :  { %v278_v28 = vmul.f32 %v1011_v26, %v268_v27 }
 0x2b2   :  { %291 = vrot.lane.b32.xlu2 %v278_v28, %s1115_s1 }
 0x30c   :  { %v292_v1 = vpop.permute.xlu2 %291 }
 0x30d   :  { %949 = vmatmul.msk.f32.vlgmr.msrb.gmra.mxu0 %vm79_vm8, %v292_v1  ;;  %950 = vmatmul.msk.f32.vlgmr.msrb.gmra.mxu1 %vm79_vm8, %v292_v1 }
 0x30e   :  { %727 = vmatpush.msrb.mxu0 %v1157_v2  ;;  %747 = vmatpush.msrb.mxu1 %v1159_v3 }
 0x310   :  { %728 = vmatpush.msrb.mxu0 %v1161_v4  ;;  %748 = vmatpush.msrb.mxu1 %v1165_v5 }
 0x312   :  { %729 = vmatpush.msrb.mxu0 %v1167_v6  ;;  %749 = vmatpush.msrb.mxu1 %v1169_v7 }
 0x314   :  { %730 = vmatpush.msrb.mxu0 %v1175_v8  ;;  %750 = vmatpush.msrb.mxu1 %v1177_v9 }
 0x316   :  { %731 = vmatpush.msrb.mxu0 %v1186_v11  ;;  %751 = vmatpush.msrb.mxu1 %v1188_v12 }
 0x318   :  { %732 = vmatpush.msrb.mxu0 %v1193_v13  ;;  %752 = vmatpush.msrb.mxu1 %v1195_v14 }
 0x31a   :  { %733 = vmatpush.msrb.mxu0 %v1201_v15  ;;  %753 = vmatpush.msrb.mxu1 %v1203_v16 }
 0x31c   :  { %734 = vmatpush.msrb.mxu0 %v1209_v17  ;;  %754 = vmatpush.msrb.mxu1 %v1211_v18 }
 0x38a   :  { %v312_v33 = vpop.f32.mrf.mxu0  ;;  %v332_v40 = vpop.f32.mrf.mxu1 }
 0x38b   :  { %v335_v35 = vadd.f32 %v312_v33, %v288_v32  ;;  %v336_v43 = vadd.f32 %v332_v40, %v289_v41 }
 0x38d   :  { %v951_v36 = vmul.f32 -1.442695, %v335_v35  ;;  %v952_v55 = vmul.f32 -1.442695, %v336_v43 }
 0x38f   :  { %1012 = vpow2.f32 %v951_v36 }
 0x395   :  { %v1013_v37 = vpop.eup %1012 }
 0x396   :  { %v340_v38 = vadd.f32 1.0, %v1013_v37 }
 0x398   :  { %1014 = vrcp.f32 %v340_v38  ;;  %v352_v46 = vand.u32 2147483648, %v340_v38  ;;  %v350_v48 = vand.u32 2147483647, %v340_v38  ;;  %vm346_vm2 = vweird.f32 %v340_v38 }
 0x399   :  { %1016 = vtanh.f32 %v336_v43 }
 0x39a   :  { %v353_v50 = vor.u32 1.1754944e-38, %v352_v46  ;;  %vm351_vm4 = vcmp.eq.f32.partialorder %v350_v48, 8.507059e+37  ;;  %1018 = vpow2.f32 %v952_v55 }
 0x39e   :  { %v1015_v42 = vpop.eup %1014 }
 0x39f   :  { %v342_v44 = vmul.f32 %v1015_v42, %v340_v38  ;;  %vm347_vm1 = vweird.f32 %v1015_v42  ;;  %v1017_v52 = vpop.eup %1016 }
 0x3a0   :  { %vm348_vm3 = vmor %vm346_vm2, %vm347_vm1  ;;  %v1019_v56 = vpop.eup %1018 }
 0x3a1   :  { %v343_v45 = vsub.f32 1.0, %v342_v44  ;;  %v360_v57 = vadd.f32 1.0, %v1019_v56 }
 0x3a3   :  { %v344_v47 = vmul.f32 %v1015_v42, %v343_v45  ;;  %1020 = vrcp.f32 %v360_v57  ;;  %v372_v20 = vand.u32 2147483648, %v360_v57  ;;  %vm366_vm6 = vweird.f32 %v360_v57 }
 0x3a4   :  { %v370_v22 = vand.u32 2147483647, %v360_v57 }
 0x3a5   :  { %v345_v49 = vadd.f32 %v1015_v42, %v344_v47  ;;  %v373_v24 = vor.u32 1.1754944e-38, %v372_v20 }
 0x3a6   :  { %vm371_vm9 = vcmp.eq.f32.partialorder %v370_v22, 8.507059e+37 }
 0x3a7   :  { %v349_v51 = vsel %vm348_vm3, %v1015_v42, %v345_v49 }
 0x3a8   :  { %v354_v53 = vsel %vm351_vm4, %v353_v50, %v349_v51 }
 0x3a9   :  { %v377_v54 = vmul.f32 %v1017_v52, %v354_v53  ;;  %v1021_v58 = vpop.eup %1020  ;;  %v376_v62 = vmul.f32 %v354_v53, %v1340_v10 }
 0x3aa   :  { %v362_v59 = vmul.f32 %v1021_v58, %v360_v57  ;;  %vm367_vm5 = vweird.f32 %v1021_v58 }
 0x3ab   :  { %379 = vrot.lane.b32.xlu1 %v377_v54, %s1115_s1  ;;  %vm368_vm7 = vmor %vm366_vm6, %vm367_vm5 }
 0x3ac   :  { %v363_v60 = vsub.f32 1.0, %v362_v59 }
 0x3ae   :  { %v364_v61 = vmul.f32 %v1021_v58, %v363_v60 }
 0x3b0   :  { %v365_v19 = vadd.f32 %v1021_v58, %v364_v61 }
 0x3b2   :  { %v369_v23 = vsel %vm368_vm7, %v1021_v58, %v365_v19 }
 0x3b3   :  { %v374_v27 = vsel %vm371_vm9, %v373_v24, %v369_v23 }
 0x41d   :  { %v380_v63 = vpop.permute.xlu1 %379 }
 0x41e   :  { %v1368_v0 = vadd.f32 %v380_v63, %v376_v62 }
 0x420   :  { %1022 = vtanh.f32 %v1368_v0 }
 0x426   :  { %v1023_v26 = vpop.eup %1022 }
 0x427   :  { %v384_v28 = vmul.f32 %v1023_v26, %v374_v27 }
 0x429   :  { %397 = vrot.lane.b32.xlu2 %v384_v28, %s1115_s1 }
 0x483   :  { %v398_v10 = vpop.permute.xlu2 %397 }
 0x484   :  { %954 = vmatmul.msk.f32.vlgmr.msrb.gmra.mxu2 %vm79_vm8, %v398_v10  ;;  %955 = vmatmul.msk.f32.vlgmr.msrb.gmra.mxu3 %vm79_vm8, %v398_v10 }
 0x485   :  { %833 = vmatpush.msrb.mxu2 %v1157_v2  ;;  %853 = vmatpush.msrb.mxu3 %v1159_v3  ;;  %v390_v2 = vpop.permute.xlu0 %389 }
 0x486   :  { %v392_v3 = vmul.f32 %v390_v2, %v1275_v21 }
 0x487   :  { %834 = vmatpush.msrb.mxu2 %v1161_v4  ;;  %854 = vmatpush.msrb.mxu3 %v1165_v5 }
 0x488   :  { %v394_v4 = vadd.f32 %v392_v3, %v1281_v25 }
 0x489   :  { %835 = vmatpush.msrb.mxu2 %v1167_v6  ;;  %855 = vmatpush.msrb.mxu3 %v1169_v7 }
 0x48b   :  { %836 = vmatpush.msrb.mxu2 %v1175_v8  ;;  %856 = vmatpush.msrb.mxu3 %v1177_v9 }
 0x48d   :  { %837 = vmatpush.msrb.mxu2 %v1186_v11  ;;  %857 = vmatpush.msrb.mxu3 %v1188_v12  ;;  %v393_v11 = vmul.f32 %v390_v2, %v1284_v30  ;;  %v496_v57 = vpop.permute.xlu0 %495 }
 0x48e   :  { %v498_v58 = vmul.f32 %v496_v57, %v1275_v21  ;;  %v499_v19 = vmul.f32 %v496_v57, %v1284_v30 }
 0x48f   :  { %838 = vmatpush.msrb.mxu2 %v1193_v13  ;;  %858 = vmatpush.msrb.mxu3 %v1195_v14  ;;  %v395_v13 = vadd.f32 %v393_v11, %v1287_v34 }
 0x490   :  { %v500_v59 = vadd.f32 %v498_v58, %v1281_v25  ;;  %v501_v22 = vadd.f32 %v499_v19, %v1287_v34 }
 0x491   :  { %839 = vmatpush.msrb.mxu2 %v1201_v15  ;;  %859 = vmatpush.msrb.mxu3 %v1203_v16 }
 0x493   :  { %840 = vmatpush.msrb.mxu2 %v1209_v17  ;;  %860 = vmatpush.msrb.mxu3 %v1211_v18 }
 0x507   :  { %v418_v5 = vpop.f32.mrf.mxu2  ;;  %v438_v12 = vpop.f32.mrf.mxu3 }
 0x508   :  { %v441_v6 = vadd.f32 %v418_v5, %v394_v4  ;;  %v442_v15 = vadd.f32 %v438_v12, %v395_v13 }
 0x50a   :  { %v956_v7 = vmul.f32 -1.442695, %v441_v6  ;;  %v957_v38 = vmul.f32 -1.442695, %v442_v15 }
 0x50c   :  { %1024 = vpow2.f32 %v956_v7 }
 0x512   :  { %v1025_v8 = vpop.eup %1024 }
 0x513   :  { %v446_v9 = vadd.f32 1.0, %v1025_v8 }
 0x515   :  { %1026 = vrcp.f32 %v446_v9  ;;  %v458_v18 = vand.u32 2147483648, %v446_v9  ;;  %v456_v29 = vand.u32 2147483647, %v446_v9  ;;  %vm452_vm11 = vweird.f32 %v446_v9 }
 0x516   :  { %1028 = vtanh.f32 %v442_v15 }
 0x517   :  { %v459_v32 = vor.u32 1.1754944e-38, %v458_v18  ;;  %vm457_vm13 = vcmp.eq.f32.partialorder %v456_v29, 8.507059e+37  ;;  %1030 = vpow2.f32 %v957_v38 }
 0x51b   :  { %v1027_v14 = vpop.eup %1026 }
 0x51c   :  { %v448_v16 = vmul.f32 %v1027_v14, %v446_v9  ;;  %vm453_vm10 = vweird.f32 %v1027_v14  ;;  %v1029_v35 = vpop.eup %1028 }
 0x51d   :  { %vm454_vm12 = vmor %vm452_vm11, %vm453_vm10  ;;  %v1031_v39 = vpop.eup %1030 }
 0x51e   :  { %v449_v17 = vsub.f32 1.0, %v448_v16  ;;  %v466_v40 = vadd.f32 1.0, %v1031_v39 }
 0x520   :  { %v450_v1 = vmul.f32 %v1027_v14, %v449_v17  ;;  %1032 = vrcp.f32 %v466_v40  ;;  %v478_v49 = vand.u32 2147483648, %v466_v40  ;;  %vm472_vm15 = vweird.f32 %v466_v40 }
 0x521   :  { %v476_v50 = vand.u32 2147483647, %v466_v40 }
 0x522   :  { %v451_v31 = vadd.f32 %v1027_v14, %v450_v1  ;;  %v479_v52 = vor.u32 1.1754944e-38, %v478_v49 }
 0x523   :  { %vm477_vm1 = vcmp.eq.f32.partialorder %v476_v50, 8.507059e+37 }
 0x524   :  { %v455_v33 = vsel %vm454_vm12, %v1027_v14, %v451_v31 }
 0x525   :  { %v460_v36 = vsel %vm457_vm13, %v459_v32, %v455_v33 }
 0x526   :  { %v483_v37 = vmul.f32 %v1029_v35, %v460_v36  ;;  %v1033_v41 = vpop.eup %1032  ;;  %v482_v45 = vmul.f32 %v460_v36, %v1368_v0 }
 0x527   :  { %v468_v42 = vmul.f32 %v1033_v41, %v466_v40  ;;  %vm473_vm14 = vweird.f32 %v1033_v41  ;;  %v602_v40 = vpop.permute.xlu0 %601 }
 0x528   :  { %485 = vrot.lane.b32.xlu1 %v483_v37, %s1115_s1  ;;  %vm474_vm0 = vmor %vm472_vm15, %vm473_vm14 }
 0x529   :  { %v469_v43 = vsub.f32 1.0, %v468_v42 }
 0x52b   :  { %v470_v44 = vmul.f32 %v1033_v41, %v469_v43 }
 0x52d   :  { %v471_v48 = vadd.f32 %v1033_v41, %v470_v44 }
 0x52f   :  { %v475_v51 = vsel %vm474_vm0, %v1033_v41, %v471_v48  ;;  %v604_v41 = vmul.f32 %v602_v40, %v1275_v21  ;;  %v605_v48 = vmul.f32 %v602_v40, %v1284_v30 }
 0x530   :  { %v480_v54 = vsel %vm477_vm1, %v479_v52, %v475_v51 }
 0x531   :  { %v606_v42 = vadd.f32 %v604_v41, %v1281_v25  ;;  %v607_v50 = vadd.f32 %v605_v48, %v1287_v34 }
 0x59a   :  { %v486_v46 = vpop.permute.xlu1 %485 }
 0x59b   :  { %v488_v47 = vadd.f32 %v486_v46, %v482_v45 }
 0x59d   :  { %1034 = vtanh.f32 %v488_v47 }
 0x5a3   :  { %v1035_v53 = vpop.eup %1034 }
 0x5a4   :  { %v490_v55 = vmul.f32 %v1035_v53, %v480_v54 }
 0x5a6   :  { %503 = vrot.lane.b32.xlu2 %v490_v55, %s1115_s1 }
 0x600   :  { %v504_v56 = vpop.permute.xlu2 %503 }
 0x601   :  { %959 = vmatmul.msk.f32.vlgmr.msra.gmra.mxu0 %vm79_vm8, %v504_v56  ;;  %960 = vmatmul.msk.f32.vlgmr.msra.gmra.mxu1 %vm79_vm8, %v504_v56 }
 0x67e   :  { %v524_v60 = vpop.f32.mrf.mxu0  ;;  %v544_v20 = vpop.f32.mrf.mxu1 }
 0x67f   :  { %v547_v61 = vadd.f32 %v524_v60, %v500_v59  ;;  %v548_v24 = vadd.f32 %v544_v20, %v501_v22 }
 0x681   :  { %v961_v62 = vmul.f32 -1.442695, %v547_v61  ;;  %v962_v9 = vmul.f32 -1.442695, %v548_v24 }
 0x683   :  { %1036 = vpow2.f32 %v961_v62 }
 0x689   :  { %v1037_v63 = vpop.eup %1036 }
 0x68a   :  { %v552_v0 = vadd.f32 1.0, %v1037_v63 }
 0x68c   :  { %1038 = vrcp.f32 %v552_v0  ;;  %v564_v28 = vand.u32 2147483648, %v552_v0  ;;  %v562_v2 = vand.u32 2147483647, %v552_v0  ;;  %vm558_vm3 = vweird.f32 %v552_v0 }
 0x68d   :  { %1040 = vtanh.f32 %v548_v24 }
 0x68e   :  { %v565_v4 = vor.u32 1.1754944e-38, %v564_v28  ;;  %vm563_vm5 = vcmp.eq.f32.partialorder %v562_v2, 8.507059e+37  ;;  %1042 = vpow2.f32 %v962_v9 }
 0x692   :  { %v1039_v23 = vpop.eup %1038 }
 0x693   :  { %v554_v26 = vmul.f32 %v1039_v23, %v552_v0  ;;  %vm559_vm2 = vweird.f32 %v1039_v23  ;;  %v1041_v6 = vpop.eup %1040 }
 0x694   :  { %vm560_vm4 = vmor %vm558_vm3, %vm559_vm2  ;;  %v1043_v11 = vpop.eup %1042 }
 0x695   :  { %v555_v27 = vsub.f32 1.0, %v554_v26  ;;  %v572_v12 = vadd.f32 1.0, %v1043_v11 }
 0x697   :  { %v556_v10 = vmul.f32 %v1039_v23, %v555_v27  ;;  %1044 = vrcp.f32 %v572_v12  ;;  %v584_v31 = vand.u32 2147483648, %v572_v12  ;;  %vm578_vm7 = vweird.f32 %v572_v12 }
 0x698   :  { %v582_v32 = vand.u32 2147483647, %v572_v12 }
 0x699   :  { %v557_v3 = vadd.f32 %v1039_v23, %v556_v10  ;;  %v585_v35 = vor.u32 1.1754944e-38, %v584_v31 }
 0x69a   :  { %vm583_vm10 = vcmp.eq.f32.partialorder %v582_v32, 8.507059e+37 }
 0x69b   :  { %v561_v5 = vsel %vm560_vm4, %v1039_v23, %v557_v3 }
 0x69c   :  { %v566_v7 = vsel %vm563_vm5, %v565_v4, %v561_v5 }
 0x69d   :  { %v589_v8 = vmul.f32 %v1041_v6, %v566_v7  ;;  %v1045_v13 = vpop.eup %1044  ;;  %v588_v17 = vmul.f32 %v566_v7, %v488_v47 }
 0x69e   :  { %v574_v14 = vmul.f32 %v1045_v13, %v572_v12  ;;  %vm579_vm6 = vweird.f32 %v1045_v13  ;;  %v708_v12 = vpop.permute.xlu0 %707 }
 0x69f   :  { %591 = vrot.lane.b32.xlu1 %v589_v8, %s1115_s1  ;;  %vm580_vm9 = vmor %vm578_vm7, %vm579_vm6 }
 0x6a0   :  { %v575_v15 = vsub.f32 1.0, %v574_v14 }
 0x6a2   :  { %v576_v16 = vmul.f32 %v1045_v13, %v575_v15 }
 0x6a4   :  { %v577_v29 = vadd.f32 %v1045_v13, %v576_v16 }
 0x6a6   :  { %v581_v33 = vsel %vm580_vm9, %v1045_v13, %v577_v29  ;;  %v710_v13 = vmul.f32 %v708_v12, %v1275_v21  ;;  %v711_v29 = vmul.f32 %v708_v12, %v1284_v30 }
 0x6a7   :  { %v586_v37 = vsel %vm583_vm10, %v585_v35, %v581_v33 }
 0x6a8   :  { %v712_v14 = vadd.f32 %v710_v13, %v1281_v25  ;;  %v713_v32 = vadd.f32 %v711_v29, %v1287_v34 }
 0x711   :  { %v592_v18 = vpop.permute.xlu1 %591 }
 0x712   :  { %v594_v1 = vadd.f32 %v592_v18, %v588_v17 }
 0x714   :  { %1046 = vtanh.f32 %v594_v1 }
 0x71a   :  { %v1047_v36 = vpop.eup %1046 }
 0x71b   :  { %v596_v38 = vmul.f32 %v1047_v36, %v586_v37 }
 0x71d   :  { %609 = vrot.lane.b32.xlu2 %v596_v38, %s1115_s1 }
 0x777   :  { %v610_v39 = vpop.permute.xlu2 %609 }
 0x778   :  { %964 = vmatmul.msk.f32.vlgmr.msra.gmra.mxu2 %vm79_vm8, %v610_v39  ;;  %965 = vmatmul.msk.f32.vlgmr.msra.gmra.mxu3 %vm79_vm8, %v610_v39 }
 0x7fb   :  { %v630_v43 = vpop.f32.mrf.mxu2  ;;  %v650_v49 = vpop.f32.mrf.mxu3 }
 0x7fc   :  { %v653_v44 = vadd.f32 %v630_v43, %v606_v42  ;;  %v654_v52 = vadd.f32 %v650_v49, %v607_v50 }
 0x7fe   :  { %v966_v45 = vmul.f32 -1.442695, %v653_v44  ;;  %v967_v0 = vmul.f32 -1.442695, %v654_v52 }
 0x800   :  { %1048 = vpow2.f32 %v966_v45 }
 0x806   :  { %v1049_v46 = vpop.eup %1048 }
 0x807   :  { %v658_v47 = vadd.f32 1.0, %v1049_v46 }
 0x809   :  { %1050 = vrcp.f32 %v658_v47  ;;  %v670_v55 = vand.u32 2147483648, %v658_v47  ;;  %v668_v57 = vand.u32 2147483647, %v658_v47  ;;  %vm664_vm12 = vweird.f32 %v658_v47 }
 0x80a   :  { %1052 = vtanh.f32 %v654_v52 }
 0x80b   :  { %v671_v59 = vor.u32 1.1754944e-38, %v670_v55  ;;  %vm669_vm14 = vcmp.eq.f32.partialorder %v668_v57, 8.507059e+37  ;;  %1054 = vpow2.f32 %v967_v0 }
 0x80f   :  { %v1051_v51 = vpop.eup %1050 }
 0x810   :  { %v660_v53 = vmul.f32 %v1051_v51, %v658_v47  ;;  %vm665_vm11 = vweird.f32 %v1051_v51  ;;  %v1053_v61 = vpop.eup %1052 }
 0x811   :  { %vm666_vm13 = vmor %vm664_vm12, %vm665_vm11  ;;  %v1055_v19 = vpop.eup %1054 }
 0x812   :  { %v661_v54 = vsub.f32 1.0, %v660_v53  ;;  %v678_v20 = vadd.f32 1.0, %v1055_v19 }
 0x814   :  { %v662_v56 = vmul.f32 %v1051_v51, %v661_v54  ;;  %1056 = vrcp.f32 %v678_v20  ;;  %v690_v3 = vand.u32 2147483648, %v678_v20  ;;  %vm684_vm0 = vweird.f32 %v678_v20 }
 0x815   :  { %v688_v4 = vand.u32 2147483647, %v678_v20 }
 0x816   :  { %v663_v58 = vadd.f32 %v1051_v51, %v662_v56  ;;  %v691_v6 = vor.u32 1.1754944e-38, %v690_v3 }
 0x817   :  { %vm689_vm2 = vcmp.eq.f32.partialorder %v688_v4, 8.507059e+37 }
 0x818   :  { %v667_v60 = vsel %vm666_vm13, %v1051_v51, %v663_v58 }
 0x819   :  { %v672_v62 = vsel %vm669_vm14, %v671_v59, %v667_v60 }
 0x81a   :  { %v695_v63 = vmul.f32 %v1053_v61, %v672_v62  ;;  %v1057_v22 = vpop.eup %1056  ;;  %v694_v27 = vmul.f32 %v672_v62, %v594_v1 }
 0x81b   :  { %v680_v23 = vmul.f32 %v1057_v22, %v678_v20  ;;  %vm685_vm15 = vweird.f32 %v1057_v22  ;;  %v814_v20 = vpop.permute.xlu0 %813 }
 0x81c   :  { %697 = vrot.lane.b32.xlu1 %v695_v63, %s1115_s1  ;;  %vm686_vm1 = vmor %vm684_vm0, %vm685_vm15  ;;  %v817_v3 = vmul.f32 %v814_v20, %v1284_v30 }
 0x81d   :  { %v681_v24 = vsub.f32 1.0, %v680_v23 }
 0x81f   :  { %v682_v26 = vmul.f32 %v1057_v22, %v681_v24 }
 0x821   :  { %v683_v2 = vadd.f32 %v1057_v22, %v682_v26 }
 0x823   :  { %v687_v5 = vsel %vm686_vm1, %v1057_v22, %v683_v2  ;;  %v816_v22 = vmul.f32 %v814_v20, %v1275_v21  ;;  %v819_v21 = vadd.f32 %v817_v3, %v1287_v34 }
 0x824   :  { %v692_v8 = vsel %vm689_vm2, %v691_v6, %v687_v5 }
 0x825   :  { %v818_v23 = vadd.f32 %v816_v22, %v1281_v25 }
 0x88e   :  { %v698_v28 = vpop.permute.xlu1 %697 }
 0x88f   :  { %v700_v10 = vadd.f32 %v698_v28, %v694_v27  ;;  %v986_v27 = vld [vmem:[%s1441_s4] ss:$0 sm:$0xff] }
 0x891   :  { %1058 = vtanh.f32 %v700_v10 }
 0x897   :  { %v1059_v7 = vpop.eup %1058 }
 0x898   :  { %v702_v9 = vmul.f32 %v1059_v7, %v692_v8 }
 0x89a   :  { %715 = vrot.lane.b32.xlu2 %v702_v9, %s1115_s1 }
 0x8f4   :  { %v716_v11 = vpop.permute.xlu2 %715 }
 0x8f5   :  { %969 = vmatmul.msk.f32.vlgmr.msrb.gmra.mxu0 %vm79_vm8, %v716_v11  ;;  %970 = vmatmul.msk.f32.vlgmr.msrb.gmra.mxu1 %vm79_vm8, %v716_v11 }
 0x972   :  { %v736_v15 = vpop.f32.mrf.mxu0  ;;  %v756_v31 = vpop.f32.mrf.mxu1 }
 0x973   :  { %v759_v16 = vadd.f32 %v736_v15, %v712_v14  ;;  %v760_v35 = vadd.f32 %v756_v31, %v713_v32 }
 0x975   :  { %v971_v17 = vmul.f32 -1.442695, %v759_v16  ;;  %v972_v47 = vmul.f32 -1.442695, %v760_v35 }
 0x977   :  { %1060 = vpow2.f32 %v971_v17 }
 0x97d   :  { %v1061_v18 = vpop.eup %1060 }
 0x97e   :  { %v764_v1 = vadd.f32 1.0, %v1061_v18 }
 0x980   :  { %1062 = vrcp.f32 %v764_v1  ;;  %v776_v38 = vand.u32 2147483648, %v764_v1  ;;  %v774_v40 = vand.u32 2147483647, %v764_v1  ;;  %vm770_vm4 = vweird.f32 %v764_v1 }
 0x981   :  { %1064 = vtanh.f32 %v760_v35 }
 0x982   :  { %v777_v42 = vor.u32 1.1754944e-38, %v776_v38  ;;  %vm775_vm6 = vcmp.eq.f32.partialorder %v774_v40, 8.507059e+37  ;;  %1066 = vpow2.f32 %v972_v47 }
 0x986   :  { %v1063_v33 = vpop.eup %1062 }
 0x987   :  { %v766_v36 = vmul.f32 %v1063_v33, %v764_v1  ;;  %vm771_vm3 = vweird.f32 %v1063_v33  ;;  %v1065_v44 = vpop.eup %1064 }
 0x988   :  { %vm772_vm5 = vmor %vm770_vm4, %vm771_vm3  ;;  %v1067_v48 = vpop.eup %1066  ;;  %vm934_vm4 = vcmask 7168  }
 0x989   :  { %v767_v37 = vsub.f32 1.0, %v766_v36  ;;  %v784_v49 = vadd.f32 1.0, %v1067_v48 }
 0x98b   :  { %v768_v39 = vmul.f32 %v1063_v33, %v767_v37  ;;  %1068 = vrcp.f32 %v784_v49  ;;  %v796_v58 = vand.u32 2147483648, %v784_v49  ;;  %vm790_vm9 = vweird.f32 %v784_v49 }
 0x98c   :  { %v794_v59 = vand.u32 2147483647, %v784_v49 }
 0x98d   :  { %v769_v41 = vadd.f32 %v1063_v33, %v768_v39  ;;  %v797_v61 = vor.u32 1.1754944e-38, %v796_v58 }
 0x98e   :  { %vm795_vm11 = vcmp.eq.f32.partialorder %v794_v59, 8.507059e+37 }
 0x98f   :  { %v773_v43 = vsel %vm772_vm5, %v1063_v33, %v769_v41 }
 0x990   :  { %v778_v45 = vsel %vm775_vm6, %v777_v42, %v773_v43 }
 0x991   :  { %v801_v46 = vmul.f32 %v1065_v44, %v778_v45  ;;  %v1069_v50 = vpop.eup %1068  ;;  %v800_v54 = vmul.f32 %v778_v45, %v700_v10 }
 0x992   :  { %v786_v51 = vmul.f32 %v1069_v50, %v784_v49  ;;  %vm791_vm7 = vweird.f32 %v1069_v50  ;;  %v987_v49 = vld [vmem:[#allocation2] ss:$0 sm:$0xff] }
 0x993   :  { %803 = vrot.lane.b32.xlu1 %v801_v46, %s1115_s1  ;;  %vm792_vm10 = vmor %vm790_vm9, %vm791_vm7 }
 0x994   :  { %v787_v52 = vsub.f32 1.0, %v786_v51 }
 0x996   :  { %v788_v53 = vmul.f32 %v1069_v50, %v787_v52 }
 0x998   :  { %v789_v57 = vadd.f32 %v1069_v50, %v788_v53 }
 0x99a   :  { %v793_v60 = vsel %vm792_vm10, %v1069_v50, %v789_v57 }
 0x99b   :  { %v798_v63 = vsel %vm795_vm11, %v797_v61, %v793_v60 }
 0xa05   :  { %v804_v55 = vpop.permute.xlu1 %803 }
 0xa06   :  { %v806_v56 = vadd.f32 %v804_v55, %v800_v54 }
 0xa08   :  { %1070 = vtanh.f32 %v806_v56 }
 0xa0e   :  { %v1071_v62 = vpop.eup %1070 }
 0xa0f   :  { %v808_v0 = vmul.f32 %v1071_v62, %v798_v63 }
 0xa11   :  { %821 = vrot.lane.b32.xlu2 %v808_v0, %s1115_s1 }
 0xa19   :  { %918 = vrot.lane.b32.xlu2 %v986_v27, %s1115_s1 }
 0xa6b   :  { %v822_v19 = vpop.permute.xlu2 %821 }
 0xa6c   :  { %974 = vmatmul.msk.f32.vlgmr.msrb.gmra.mxu2 %vm79_vm8, %v822_v19  ;;  %975 = vmatmul.msk.f32.vlgmr.msrb.gmra.mxu3 %vm79_vm8, %v822_v19 }
 0xa73   :  { %v919_v44 = vpop.permute.xlu2 %918 }
 0xaef   :  { %v842_v24 = vpop.f32.mrf.mxu2  ;;  %v862_v4 = vpop.f32.mrf.mxu3 }
 0xaf0   :  { %v865_v26 = vadd.f32 %v842_v24, %v818_v23  ;;  %v866_v25 = vadd.f32 %v862_v4, %v819_v21 }
 0xaf2   :  { %v976_v28 = vmul.f32 -1.442695, %v865_v26  ;;  %v977_v34 = vmul.f32 -1.442695, %v866_v25 }
 0xaf4   :  { %1072 = vpow2.f32 %v976_v28 }
 0xafa   :  { %v1073_v10 = vpop.eup %1072 }
 0xafb   :  { %v870_v2 = vadd.f32 1.0, %v1073_v10 }
 0xafd   :  { %1074 = vrcp.f32 %v870_v2  ;;  %v882_v8 = vand.u32 2147483648, %v870_v2  ;;  %v880_v11 = vand.u32 2147483647, %v870_v2  ;;  %vm876_vm13 = vweird.f32 %v870_v2 }
 0xafe   :  { %1076 = vtanh.f32 %v866_v25 }
 0xaff   :  { %v883_v13 = vor.u32 1.1754944e-38, %v882_v8  ;;  %vm881_vm15 = vcmp.eq.f32.partialorder %v880_v11, 8.507059e+37  ;;  %1078 = vpow2.f32 %v977_v34 }
 0xb03   :  { %v1075_v5 = vpop.eup %1074 }
 0xb04   :  { %v872_v6 = vmul.f32 %v1075_v5, %v870_v2  ;;  %vm877_vm12 = vweird.f32 %v1075_v5  ;;  %v1077_v30 = vpop.eup %1076 }
 0xb05   :  { %vm878_vm14 = vmor %vm876_vm13, %vm877_vm12  ;;  %v1079_v17 = vpop.eup %1078 }
 0xb06   :  { %v873_v7 = vsub.f32 1.0, %v872_v6  ;;  %v890_v18 = vadd.f32 1.0, %v1079_v17 }
 0xb08   :  { %v874_v9 = vmul.f32 %v1075_v5, %v873_v7  ;;  %1080 = vrcp.f32 %v890_v18  ;;  %v902_v38 = vand.u32 2147483648, %v890_v18  ;;  %vm896_vm1 = vweird.f32 %v890_v18 }
 0xb09   :  { %v900_v39 = vand.u32 2147483647, %v890_v18 }
 0xb0a   :  { %v875_v12 = vadd.f32 %v1075_v5, %v874_v9  ;;  %v903_v41 = vor.u32 1.1754944e-38, %v902_v38 }
 0xb0b   :  { %vm901_vm3 = vcmp.eq.f32.partialorder %v900_v39, 8.507059e+37 }
 0xb0c   :  { %v879_v14 = vsel %vm878_vm14, %v1075_v5, %v875_v12 }
 0xb0d   :  { %v884_v15 = vsel %vm881_vm15, %v883_v13, %v879_v14 }
 0xb0e   :  { %v907_v16 = vmul.f32 %v1077_v30, %v884_v15  ;;  %v1081_v1 = vpop.eup %1080  ;;  %v906_v33 = vmul.f32 %v884_v15, %v806_v56 }
 0xb0f   :  { %v892_v29 = vmul.f32 %v1081_v1, %v890_v18  ;;  %vm897_vm0 = vweird.f32 %v1081_v1 }
 0xb10   :  { %909 = vrot.lane.b32.xlu1 %v907_v16, %s1115_s1  ;;  %vm898_vm2 = vmor %vm896_vm1, %vm897_vm0 }
 0xb11   :  { %v893_v31 = vsub.f32 1.0, %v892_v29 }
 0xb13   :  { %v894_v32 = vmul.f32 %v1081_v1, %v893_v31 }
 0xb15   :  { %v895_v37 = vadd.f32 %v1081_v1, %v894_v32 }
 0xb17   :  { %v899_v40 = vsel %vm898_vm2, %v1081_v1, %v895_v37 }
 0xb18   :  { %v904_v43 = vsel %vm901_vm3, %v903_v41, %v899_v40 }
 0xb82   :  { %v910_v35 = vpop.permute.xlu1 %909 }
 0xb83   :  { %v912_v36 = vadd.f32 %v910_v35, %v906_v33 }
 0xb85   :  { %1082 = vtanh.f32 %v912_v36 }
 0xb8b   :  { %v1083_v42 = vpop.eup %1082 }
 0xb8c   :  { %v914_v45 = vmul.f32 %v1083_v42, %v904_v43 }
 0xb8e   :  { %v921_v46 = vmul.f32 %v919_v44, %v914_v45 }
 0xb90   :  { %923 = vrot.lane.b32.xlu0 %v921_v46, %s1115_s1 }
 0xc02   :  { %v924_v47 = vpop.permute.xlu0 %923 }
 0xc03   :  { %v926_v48 = vsel %vm79_vm8, %v924_v47, 0.0 }
 0xc04   :  { %927 = vadd.xlane.f32.xlu1 %v926_v48 }
 0xc77   :  { %v928_v50 = vpop.xlane.xlu1 %927 }
 0xc78   :  { %v933_v51 = vadd.f32 %v987_v49, %v928_v50 }
 0xc7a   :  { %935 = vst.msk [vmem:[%s1443_s6] sm:$0xff] %vm934_vm4, %v933_v51 }
 0xc7b   :  { %940 = vsyncpa [#allocation4], 1 }

</bundles_post_ra>
